<compile_context>
chip_gen: v5e
topology: v5e:2x2
jax: 0.10.0
libtpu: 0.0.40
codegen_flags: <defaults>
</compile_context>

<pallas_src>
import functools

import numpy as np

import jax
import jax.numpy as jnp
from jax.experimental import pallas as pl
from jax.experimental.pallas import tpu as pltpu

N = 2           # batch
H = 16          # height
W = 16          # width
C = 8           # in_channels == out_channels (forward adds x to conv outputs)
MAXPAD = 2      # H-padding needed by the 5x5 convs
WC = W * C      # lane-dense width (= 128)
ROW0 = 8        # first interior row of the pad slab (multiple of 8 => aligned stores)
ROWGAP = 8      # zero rows between / below images (>= 2*MAXPAD, multiple of 8)
ROWSTRIDE = H + ROWGAP   # 24


# --------------------------- host-side weight prep ---------------------------
def _toeplitz(w_hwio, width):
    """Block-Toeplitz matrices T[kh] of shape (width*Cin, width*Cout).

    out[h, wo*Cout + co] = sum_kh  padded_rows[h + kh, :] @ T[kh]
    implements a SAME-padded (in W) cross-correlation; W-padding is folded into
    the band structure, H-padding is handled by the in-kernel pad buffer.
    """
    k = w_hwio.shape[0]
    cin, cout = w_hwio.shape[2], w_hwio.shape[3]
    p = k // 2
    t = np.zeros((k, width * cin, width * cout), np.float32)
    for kh in range(k):
        for wo in range(width):
            for kw in range(k):
                wi = wo + kw - p
                if 0 <= wi < width:
                    t[kh,
                      wi * cin:(wi + 1) * cin,
                      wo * cout:(wo + 1) * cout] = w_hwio[kh, kw]
    return t


def _oihw_to_hwio(w):
    return np.asarray(w, np.float32).transpose(2, 3, 1, 0)


def _pad3_to5(w3_hwio):
    out = np.zeros((5, 5, C, C), np.float32)
    out[1:4, 1:4] = w3_hwio
    return out


# --------------------------------- kernel -----------------------------------
def mfam0_kernel(x_ref, t1_ref, b1_ref, t2_ref, b2_ref, t15_ref, bn_ref,
                 out_ref, pad_ref, imr_ref, *, group):
    m_out = imr_ref.shape[0]

    # Zero the pad slab (borders must be zero; interiors are overwritten below).
    # With the batch-merged grid=(1,) this runs exactly once per launch.
    pad_ref[...] = jnp.zeros(pad_ref.shape, pad_ref.dtype)

    def fill_interior(vals):                 # vals: (m_out, WC) f32
        for g in range(group):
            r = ROW0 + g * ROWSTRIDE
            pad_ref[r:r + H, :] = vals[g * ROWSTRIDE:g * ROWSTRIDE + H, :]

    def im2row(k, h0):
        # k sublane-shifted windows of the pad slab laid side-by-side in lanes;
        # the only place activations are cast to bf16 (MXU operand).
        for kh in range(k):
            imr_ref[:, kh * WC:(kh + 1) * WC] = (
                pad_ref[h0 + kh:h0 + kh + m_out, :].astype(imr_ref.dtype))

    # ---- load the input image(s) into the pad slab (aligned f32 stores) -----
    for g in range(group):
        r = ROW0 + g * ROWSTRIDE
        pad_ref[r:r + H, :] = x_ref[g]

    # ---- stage 1: fused conv_3_1 | conv_5_1 (branch-concat output lanes) -----
    im2row(5, ROW0 - MAXPAD)
    y1 = jnp.dot(imr_ref[...], t1_ref[...], preferred_element_type=jnp.float32)
    y1 = jnp.maximum(y1 + b1_ref[...], 0.0)
    s = y1[:, :WC] + y1[:, WC:]              # relu(conv_3_1(x)) + relu(conv_5_1(x))

    # ---- stage 2: fused conv_3_2 | conv_5_2 on s -----------------------------
    fill_interior(s)
    im2row(5, ROW0 - MAXPAD)
    y2 = jnp.dot(imr_ref[...], t2_ref[...], preferred_element_type=jnp.float32)
    y2 = jnp.maximum(y2 + b2_ref[...], 0.0)
    x_mul = y2[:, :WC] * y2[:, WC:]          # x_3_2 * x_5_2

    # ---- stage 3: conv_1_5 = 3x3 conv (bias-free) + folded eval-mode BN ------
    fill_interior(x_mul + s)
    im2row(3, ROW0 - 1)
    y3 = jnp.dot(imr_ref[:, :3 * WC], t15_ref[...],
                 preferred_element_type=jnp.float32) + bn_ref[...]

    # ---- out = relu(x + conv_1_5(...)) : full (16, 128) unmasked stores ------
    for g in range(group):
        out_ref[g] = jnp.maximum(
            x_ref[g] + y3[g * ROWSTRIDE:g * ROWSTRIDE + H, :], 0.0)


# -------------------------------- wrapper ------------------------------------
def _tensorcores_per_chip():
    """Best-effort TensorCores-per-device query (v7x: 2, v5e/v6e: 1)."""
    try:
        return max(int(getattr(jax.devices()[0], "num_cores", 1) or 1), 1)
    except Exception:
        return 1


def mfam0_forward(x_nchw, params, group=None):
    """x_nchw: (N, C, H, W) like PyTorch.  params: PyTorch-layout weights."""
    (w31, b31, w51, b51, w32, b32, w52, b52, w15,
     bn_gamma, bn_beta, bn_mean, bn_var, bn_eps) = params

    n, c, h, w = x_nchw.shape
    assert (c, h, w) == (C, H, W)

    # ---- host-side parameter prep (done once per weight set) ----
    w31_h, w51_h = _oihw_to_hwio(w31), _oihw_to_hwio(w51)
    w32_h, w52_h = _oihw_to_hwio(w32), _oihw_to_hwio(w52)
    w15_h = _oihw_to_hwio(w15)

    # fold eval-mode BatchNorm (gamma/beta/running stats) into conv_1_5
    scale = np.asarray(bn_gamma) / np.sqrt(np.asarray(bn_var) + bn_eps)
    shift = np.asarray(bn_beta) - np.asarray(bn_mean) * scale
    w15_h = w15_h * scale[None, None, None, :].astype(np.float32)

    # block-Toeplitz weights, branch-concatenated, flattened to (k*WC, out_lanes)
    t1 = np.concatenate([_toeplitz(_pad3_to5(w31_h), W),
                         _toeplitz(w51_h, W)], axis=-1).reshape(5 * WC, 2 * WC)
    t2 = np.concatenate([_toeplitz(_pad3_to5(w32_h), W),
                         _toeplitz(w52_h, W)], axis=-1).reshape(5 * WC, 2 * WC)
    t15 = _toeplitz(w15_h, W).reshape(3 * WC, WC)

    bias1 = np.concatenate([np.tile(np.asarray(b31, np.float32), W),
                            np.tile(np.asarray(b51, np.float32), W)])[None, :]
    bias2 = np.concatenate([np.tile(np.asarray(b32, np.float32), W),
                            np.tile(np.asarray(b52, np.float32), W)])[None, :]
    bn_shift = np.tile(shift.astype(np.float32), W)[None, :]

    # bf16 for MXU operands; biases / BN shift stay f32 (added to f32 accumulator)
    weight_args = (jnp.asarray(t1, jnp.bfloat16), jnp.asarray(bias1, jnp.float32),
                   jnp.asarray(t2, jnp.bfloat16), jnp.asarray(bias2, jnp.float32),
                   jnp.asarray(t15, jnp.bfloat16), jnp.asarray(bn_shift, jnp.float32))

    # Single-TC chips (v5e/v6e): merge the whole small batch into one grid step
    # (M=40 matmuls, one launch).  Multi-TC chips (v7x): one image per step.
    if group is None:
        group = 1 if _tensorcores_per_chip() >= 2 else n
    group = max(1, min(group, n))
    assert n % group == 0
    steps = n // group
    pad_rows = ROW0 + group * ROWSTRIDE
    m_out = (group - 1) * ROWSTRIDE + H

    # NCHW -> lane-dense (N, H, W*C)
    # TODO(synk): in a multi-layer model keep activations in this lane-dense
    # layout across layers so these transposes don't add HBM round trips.
    x2d = jnp.transpose(x_nchw, (0, 2, 3, 1)).reshape(n, H, WC)

    act_spec = pl.BlockSpec((group, H, WC), lambda i: (i, 0, 0))

    def full_spec(arr):
        nd = arr.ndim
        return pl.BlockSpec(arr.shape, lambda i, _nd=nd: (0,) * _nd)

    flops = 2 * steps * m_out * (2 * (5 * WC) * (2 * WC) + (3 * WC) * WC)
    bytes_accessed = (sum(int(a.size) * a.dtype.itemsize for a in weight_args)
                      + 2 * n * H * WC * 4)

    out2d = pl.pallas_call(
        functools.partial(mfam0_kernel, group=group),
        out_shape=jax.ShapeDtypeStruct((n, H, WC), jnp.float32),
        grid=(steps,),
        in_specs=[act_spec] + [full_spec(a) for a in weight_args],
        out_specs=act_spec,
        scratch_shapes=[pltpu.VMEM((pad_rows, WC), jnp.float32),
                        pltpu.VMEM((m_out, 5 * WC), jnp.bfloat16)],
        compiler_params=pltpu.CompilerParams(
            dimension_semantics=("parallel",)),
        cost_estimate=pl.CostEstimate(flops=int(flops), transcendentals=0,
                                      bytes_accessed=int(bytes_accessed)),
    )(x2d, *weight_args)

    return jnp.transpose(out2d.reshape(n, H, W, C), (0, 3, 1, 2))


# ---------------- plain-JAX reference (for correctness check) ----------------
def _conv_nchw(x, w, b=None):
    y = jax.lax.conv_general_dilated(
        x, w, window_strides=(1, 1), padding="SAME",
        dimension_numbers=("NCHW", "OIHW", "NCHW"),
        precision=jax.lax.Precision.HIGHEST)
    return y if b is None else y + b[None, :, None, None]


def mfam0_reference(x, params):
    (w31, b31, w51, b51, w32, b32, w52, b52, w15,
     bn_gamma, bn_beta, bn_mean, bn_var, bn_eps) = params
    x_3_1 = jax.nn.relu(_conv_nchw(x, w31, b31))
    x_5_1 = jax.nn.relu(_conv_nchw(x, w51, b51))
    x_3_2 = jax.nn.relu(_conv_nchw(x_3_1 + x_5_1, w32, b32))
    x_5_2 = jax.nn.relu(_conv_nchw(x_5_1 + x_3_1, w52, b52))
    x_mul = x_3_2 * x_5_2
    y = _conv_nchw(x_mul + x_3_1 + x_5_1, w15)
    scale = bn_gamma / jnp.sqrt(bn_var + bn_eps)
    shift = bn_beta - bn_mean * scale
    y = y * scale[None, :, None, None] + shift[None, :, None, None]
    return jax.nn.relu(x + y)


if __name__ == "__main__":
    key = jax.random.PRNGKey(0)
    ks = jax.random.split(key, 10)

    x = jax.random.normal(ks[0], (N, C, H, W), jnp.float32)

    def wconv(k, kk):
        return jax.random.normal(k, (C, C, kk, kk), jnp.float32) * 0.1

    def wbias(k):
        return jax.random.normal(k, (C,), jnp.float32) * 0.1

    w31, b31 = wconv(ks[1], 3), wbias(ks[2])
    w51, b51 = wconv(ks[3], 5), wbias(ks[4])
    w32, b32 = wconv(ks[5], 3), wbias(ks[6])
    w52, b52 = wconv(ks[7], 5), wbias(ks[8])
    w15 = wconv(ks[9], 3)  # BasicConv2d conv: bias=False

    # BatchNorm2d in eval mode with freshly-initialized params / running stats.
    # TODO(synk): for a trained model, pass the real gamma/beta/mean/var here.
    bn_gamma = jnp.ones((C,), jnp.float32)
    bn_beta = jnp.zeros((C,), jnp.float32)
    bn_mean = jnp.zeros((C,), jnp.float32)
    bn_var = jnp.ones((C,), jnp.float32)
    bn_eps = 1e-5

    params = (w31, b31, w51, b51, w32, b32, w52, b52, w15,
              bn_gamma, bn_beta, bn_mean, bn_var, bn_eps)

    out = jax.block_until_ready(mfam0_forward(x, params))
    ref = mfam0_reference(x, params)

    # bf16 MXU operands with f32 accumulation across three chained conv stages:
    # bound the max abs error relative to the output scale (f32 build: ~1e-5).
    err = float(jnp.max(jnp.abs(out - ref)))
    ref_scale = max(1.0, float(jnp.max(jnp.abs(ref))))
    if not (err <= 2e-2 * ref_scale):
        raise AssertionError(
            f"Pallas kernel mismatch vs reference: max abs err = {err} "
            f"(scale {ref_scale})")

    print("KERNEL_OK")
</pallas_src>

<mosaic_0001>
module attributes {stable_mosaic.version = 11 : i64} {
  func.func @mfam0_kernel(%arg0: i32, %arg1: memref<2x16x128xf32, #tpu.memory_space<vmem>>, %arg2: memref<640x256xbf16, #tpu.memory_space<vmem>>, %arg3: memref<1x256xf32, #tpu.memory_space<vmem>>, %arg4: memref<640x256xbf16, #tpu.memory_space<vmem>>, %arg5: memref<1x256xf32, #tpu.memory_space<vmem>>, %arg6: memref<384x128xbf16, #tpu.memory_space<vmem>>, %arg7: memref<1x128xf32, #tpu.memory_space<vmem>>, %arg8: memref<2x16x128xf32, #tpu.memory_space<vmem>>, %arg9: memref<56x128xf32, #tpu.memory_space<vmem>>, %arg10: memref<40x640xbf16, #tpu.memory_space<vmem>>) attributes {dimension_semantics = [#tpu.dimension_semantics<parallel>], iteration_bounds = array<i64: 1>, scalar_prefetch = 0 : i64, scratch_operands = 2 : i64, tpu.core_type = #tpu.core_type<tc>, window_params = [{transform_indices = @transform_0, window_bounds = array<i64: 2, 16, 128>}, {pipeline_mode = #tpu.pipeline_mode<synchronous>, transform_indices = @transform_1, window_bounds = array<i64: 640, 256>}, {pipeline_mode = #tpu.pipeline_mode<synchronous>, transform_indices = @transform_2, window_bounds = array<i64: 1, 256>}, {pipeline_mode = #tpu.pipeline_mode<synchronous>, transform_indices = @transform_3, window_bounds = array<i64: 640, 256>}, {pipeline_mode = #tpu.pipeline_mode<synchronous>, transform_indices = @transform_4, window_bounds = array<i64: 1, 256>}, {pipeline_mode = #tpu.pipeline_mode<synchronous>, transform_indices = @transform_5, window_bounds = array<i64: 384, 128>}, {pipeline_mode = #tpu.pipeline_mode<synchronous>, transform_indices = @transform_6, window_bounds = array<i64: 1, 128>}, {transform_indices = @transform_7, window_bounds = array<i64: 2, 16, 128>}]} {
    %cst = arith.constant 0.000000e+00 : f32
    %0 = vector.broadcast %cst : f32 to vector<56x128xf32>
    %c0 = arith.constant 0 : index
    %c0_0 = arith.constant 0 : index
    %1 = vector.load %arg9[%c0, %c0_0] : memref<56x128xf32, #tpu.memory_space<vmem>>, vector<56x128xf32>
    tpu.vector_store %arg9[%c0, %c0_0], %0 {strides = array<i32>} : memref<56x128xf32, #tpu.memory_space<vmem>>, vector<56x128xf32>,
    %c0_1 = arith.constant 0 : index
    %c0_2 = arith.constant 0 : index
    %c0_3 = arith.constant 0 : index
    %2 = vector.load %arg1[%c0_1, %c0_2, %c0_3] : memref<2x16x128xf32, #tpu.memory_space<vmem>>, vector<1x16x128xf32>
    %3 = vector.shape_cast %2 : vector<1x16x128xf32> to vector<16x128xf32>
    %c8 = arith.constant 8 : index
    %c0_4 = arith.constant 0 : index
    %4 = vector.load %arg9[%c8, %c0_4] : memref<56x128xf32, #tpu.memory_space<vmem>>, vector<16x128xf32>
    tpu.vector_store %arg9[%c8, %c0_4], %3 {strides = array<i32>} : memref<56x128xf32, #tpu.memory_space<vmem>>, vector<16x128xf32>,
    %c1 = arith.constant 1 : index
    %c0_5 = arith.constant 0 : index
    %c0_6 = arith.constant 0 : index
    %5 = vector.load %arg1[%c1, %c0_5, %c0_6] : memref<2x16x128xf32, #tpu.memory_space<vmem>>, vector<1x16x128xf32>
    %6 = vector.shape_cast %5 : vector<1x16x128xf32> to vector<16x128xf32>
    %c32 = arith.constant 32 : index
    %c0_7 = arith.constant 0 : index
    %7 = vector.load %arg9[%c32, %c0_7] : memref<56x128xf32, #tpu.memory_space<vmem>>, vector<16x128xf32>
    tpu.vector_store %arg9[%c32, %c0_7], %6 {strides = array<i32>} : memref<56x128xf32, #tpu.memory_space<vmem>>, vector<16x128xf32>,
    %c6 = arith.constant 6 : index
    %c0_8 = arith.constant 0 : index
    %8 = vector.load %arg9[%c6, %c0_8] : memref<56x128xf32, #tpu.memory_space<vmem>>, vector<40x128xf32>
    %9 = arith.truncf %8 : vector<40x128xf32> to vector<40x128xbf16>
    %c0_9 = arith.constant 0 : index
    %c0_10 = arith.constant 0 : index
    %10 = vector.load %arg10[%c0_9, %c0_10] : memref<40x640xbf16, #tpu.memory_space<vmem>>, vector<40x128xbf16>
    tpu.vector_store %arg10[%c0_9, %c0_10], %9 {strides = array<i32>} : memref<40x640xbf16, #tpu.memory_space<vmem>>, vector<40x128xbf16>,
    %c7 = arith.constant 7 : index
    %c0_11 = arith.constant 0 : index
    %11 = vector.load %arg9[%c7, %c0_11] : memref<56x128xf32, #tpu.memory_space<vmem>>, vector<40x128xf32>
    %12 = arith.truncf %11 : vector<40x128xf32> to vector<40x128xbf16>
    %c0_12 = arith.constant 0 : index
    %c128 = arith.constant 128 : index
    %13 = vector.load %arg10[%c0_12, %c128] : memref<40x640xbf16, #tpu.memory_space<vmem>>, vector<40x128xbf16>
    tpu.vector_store %arg10[%c0_12, %c128], %12 {strides = array<i32>} : memref<40x640xbf16, #tpu.memory_space<vmem>>, vector<40x128xbf16>,
    %c8_13 = arith.constant 8 : index
    %c0_14 = arith.constant 0 : index
    %14 = vector.load %arg9[%c8_13, %c0_14] : memref<56x128xf32, #tpu.memory_space<vmem>>, vector<40x128xf32>
    %15 = arith.truncf %14 : vector<40x128xf32> to vector<40x128xbf16>
    %c0_15 = arith.constant 0 : index
    %c256 = arith.constant 256 : index
    %16 = vector.load %arg10[%c0_15, %c256] : memref<40x640xbf16, #tpu.memory_space<vmem>>, vector<40x128xbf16>
    tpu.vector_store %arg10[%c0_15, %c256], %15 {strides = array<i32>} : memref<40x640xbf16, #tpu.memory_space<vmem>>, vector<40x128xbf16>,
    %c9 = arith.constant 9 : index
    %c0_16 = arith.constant 0 : index
    %17 = vector.load %arg9[%c9, %c0_16] : memref<56x128xf32, #tpu.memory_space<vmem>>, vector<40x128xf32>
    %18 = arith.truncf %17 : vector<40x128xf32> to vector<40x128xbf16>
    %c0_17 = arith.constant 0 : index
    %c384 = arith.constant 384 : index
    %19 = vector.load %arg10[%c0_17, %c384] : memref<40x640xbf16, #tpu.memory_space<vmem>>, vector<40x128xbf16>
    tpu.vector_store %arg10[%c0_17, %c384], %18 {strides = array<i32>} : memref<40x640xbf16, #tpu.memory_space<vmem>>, vector<40x128xbf16>,
    %c10 = arith.constant 10 : index
    %c0_18 = arith.constant 0 : index
    %20 = vector.load %arg9[%c10, %c0_18] : memref<56x128xf32, #tpu.memory_space<vmem>>, vector<40x128xf32>
    %21 = arith.truncf %20 : vector<40x128xf32> to vector<40x128xbf16>
    %c0_19 = arith.constant 0 : index
    %c512 = arith.constant 512 : index
    %22 = vector.load %arg10[%c0_19, %c512] : memref<40x640xbf16, #tpu.memory_space<vmem>>, vector<40x128xbf16>
    tpu.vector_store %arg10[%c0_19, %c512], %21 {strides = array<i32>} : memref<40x640xbf16, #tpu.memory_space<vmem>>, vector<40x128xbf16>,
    %c0_20 = arith.constant 0 : index
    %c0_21 = arith.constant 0 : index
    %23 = vector.load %arg10[%c0_20, %c0_21] : memref<40x640xbf16, #tpu.memory_space<vmem>>, vector<40x640xbf16>
    %c0_22 = arith.constant 0 : index
    %c0_23 = arith.constant 0 : index
    %24 = vector.load %arg2[%c0_22, %c0_23] : memref<640x256xbf16, #tpu.memory_space<vmem>>, vector<640x256xbf16>
    %cst_24 = arith.constant dense<0.000000e+00> : vector<40x256xf32>
    %25 = tpu.matmul %23, %24, %cst_24 {dimension_numbers = #tpu.dot_dimension_numbers<[1], [0], [0], [1], [0, 0, 1, 1], [], []>} : vector<40x640xbf16>, vector<640x256xbf16>, vector<40x256xf32> -> vector<40x256xf32>
    %c0_25 = arith.constant 0 : index
    %c0_26 = arith.constant 0 : index
    %26 = vector.load %arg3[%c0_25, %c0_26] : memref<1x256xf32, #tpu.memory_space<vmem>>, vector<1x256xf32>
    %27 = vector.broadcast %26 : vector<1x256xf32> to vector<40x256xf32>
    %28 = arith.addf %25, %27 : vector<40x256xf32>
    %cst_27 = arith.constant 0.000000e+00 : f32
    %29 = vector.broadcast %cst_27 : f32 to vector<40x256xf32>
    %30 = arith.maximumf %28, %29 : vector<40x256xf32>
    %31 = vector.extract_strided_slice %30 {offsets = [0, 0], sizes = [40, 128], strides = [1, 1]} : vector<40x256xf32> to vector<40x128xf32>
    %32 = vector.extract_strided_slice %30 {offsets = [0, 128], sizes = [40, 128], strides = [1, 1]} : vector<40x256xf32> to vector<40x128xf32>
    %33 = arith.addf %31, %32 : vector<40x128xf32>
    %34 = vector.extract_strided_slice %33 {offsets = [0, 0], sizes = [16, 128], strides = [1, 1]} : vector<40x128xf32> to vector<16x128xf32>
    %c8_28 = arith.constant 8 : index
    %c0_29 = arith.constant 0 : index
    %35 = vector.load %arg9[%c8_28, %c0_29] : memref<56x128xf32, #tpu.memory_space<vmem>>, vector<16x128xf32>
    tpu.vector_store %arg9[%c8_28, %c0_29], %34 {strides = array<i32>} : memref<56x128xf32, #tpu.memory_space<vmem>>, vector<16x128xf32>,
    %36 = vector.extract_strided_slice %33 {offsets = [24, 0], sizes = [16, 128], strides = [1, 1]} : vector<40x128xf32> to vector<16x128xf32>
    %c32_30 = arith.constant 32 : index
    %c0_31 = arith.constant 0 : index
    %37 = vector.load %arg9[%c32_30, %c0_31] : memref<56x128xf32, #tpu.memory_space<vmem>>, vector<16x128xf32>
    tpu.vector_store %arg9[%c32_30, %c0_31], %36 {strides = array<i32>} : memref<56x128xf32, #tpu.memory_space<vmem>>, vector<16x128xf32>,
    %c6_32 = arith.constant 6 : index
    %c0_33 = arith.constant 0 : index
    %38 = vector.load %arg9[%c6_32, %c0_33] : memref<56x128xf32, #tpu.memory_space<vmem>>, vector<40x128xf32>
    %39 = arith.truncf %38 : vector<40x128xf32> to vector<40x128xbf16>
    %c0_34 = arith.constant 0 : index
    %c0_35 = arith.constant 0 : index
    %40 = vector.load %arg10[%c0_34, %c0_35] : memref<40x640xbf16, #tpu.memory_space<vmem>>, vector<40x128xbf16>
    tpu.vector_store %arg10[%c0_34, %c0_35], %39 {strides = array<i32>} : memref<40x640xbf16, #tpu.memory_space<vmem>>, vector<40x128xbf16>,
    %c7_36 = arith.constant 7 : index
    %c0_37 = arith.constant 0 : index
    %41 = vector.load %arg9[%c7_36, %c0_37] : memref<56x128xf32, #tpu.memory_space<vmem>>, vector<40x128xf32>
    %42 = arith.truncf %41 : vector<40x128xf32> to vector<40x128xbf16>
    %c0_38 = arith.constant 0 : index
    %c128_39 = arith.constant 128 : index
    %43 = vector.load %arg10[%c0_38, %c128_39] : memref<40x640xbf16, #tpu.memory_space<vmem>>, vector<40x128xbf16>
    tpu.vector_store %arg10[%c0_38, %c128_39], %42 {strides = array<i32>} : memref<40x640xbf16, #tpu.memory_space<vmem>>, vector<40x128xbf16>,
    %c8_40 = arith.constant 8 : index
    %c0_41 = arith.constant 0 : index
    %44 = vector.load %arg9[%c8_40, %c0_41] : memref<56x128xf32, #tpu.memory_space<vmem>>, vector<40x128xf32>
    %45 = arith.truncf %44 : vector<40x128xf32> to vector<40x128xbf16>
    %c0_42 = arith.constant 0 : index
    %c256_43 = arith.constant 256 : index
    %46 = vector.load %arg10[%c0_42, %c256_43] : memref<40x640xbf16, #tpu.memory_space<vmem>>, vector<40x128xbf16>
    tpu.vector_store %arg10[%c0_42, %c256_43], %45 {strides = array<i32>} : memref<40x640xbf16, #tpu.memory_space<vmem>>, vector<40x128xbf16>,
    %c9_44 = arith.constant 9 : index
    %c0_45 = arith.constant 0 : index
    %47 = vector.load %arg9[%c9_44, %c0_45] : memref<56x128xf32, #tpu.memory_space<vmem>>, vector<40x128xf32>
    %48 = arith.truncf %47 : vector<40x128xf32> to vector<40x128xbf16>
    %c0_46 = arith.constant 0 : index
    %c384_47 = arith.constant 384 : index
    %49 = vector.load %arg10[%c0_46, %c384_47] : memref<40x640xbf16, #tpu.memory_space<vmem>>, vector<40x128xbf16>
    tpu.vector_store %arg10[%c0_46, %c384_47], %48 {strides = array<i32>} : memref<40x640xbf16, #tpu.memory_space<vmem>>, vector<40x128xbf16>,
    %c10_48 = arith.constant 10 : index
    %c0_49 = arith.constant 0 : index
    %50 = vector.load %arg9[%c10_48, %c0_49] : memref<56x128xf32, #tpu.memory_space<vmem>>, vector<40x128xf32>
    %51 = arith.truncf %50 : vector<40x128xf32> to vector<40x128xbf16>
    %c0_50 = arith.constant 0 : index
    %c512_51 = arith.constant 512 : index
    %52 = vector.load %arg10[%c0_50, %c512_51] : memref<40x640xbf16, #tpu.memory_space<vmem>>, vector<40x128xbf16>
    tpu.vector_store %arg10[%c0_50, %c512_51], %51 {strides = array<i32>} : memref<40x640xbf16, #tpu.memory_space<vmem>>, vector<40x128xbf16>,
    %c0_52 = arith.constant 0 : index
    %c0_53 = arith.constant 0 : index
    %53 = vector.load %arg10[%c0_52, %c0_53] : memref<40x640xbf16, #tpu.memory_space<vmem>>, vector<40x640xbf16>
    %c0_54 = arith.constant 0 : index
    %c0_55 = arith.constant 0 : index
    %54 = vector.load %arg4[%c0_54, %c0_55] : memref<640x256xbf16, #tpu.memory_space<vmem>>, vector<640x256xbf16>
    %cst_56 = arith.constant dense<0.000000e+00> : vector<40x256xf32>
    %55 = tpu.matmul %53, %54, %cst_56 {dimension_numbers = #tpu.dot_dimension_numbers<[1], [0], [0], [1], [0, 0, 1, 1], [], []>} : vector<40x640xbf16>, vector<640x256xbf16>, vector<40x256xf32> -> vector<40x256xf32>
    %c0_57 = arith.constant 0 : index
    %c0_58 = arith.constant 0 : index
    %56 = vector.load %arg5[%c0_57, %c0_58] : memref<1x256xf32, #tpu.memory_space<vmem>>, vector<1x256xf32>
    %57 = vector.broadcast %56 : vector<1x256xf32> to vector<40x256xf32>
    %58 = arith.addf %55, %57 : vector<40x256xf32>
    %cst_59 = arith.constant 0.000000e+00 : f32
    %59 = vector.broadcast %cst_59 : f32 to vector<40x256xf32>
    %60 = arith.maximumf %58, %59 : vector<40x256xf32>
    %61 = vector.extract_strided_slice %60 {offsets = [0, 0], sizes = [40, 128], strides = [1, 1]} : vector<40x256xf32> to vector<40x128xf32>
    %62 = vector.extract_strided_slice %60 {offsets = [0, 128], sizes = [40, 128], strides = [1, 1]} : vector<40x256xf32> to vector<40x128xf32>
    %63 = arith.mulf %61, %62 : vector<40x128xf32>
    %64 = arith.addf %63, %33 : vector<40x128xf32>
    %65 = vector.extract_strided_slice %64 {offsets = [0, 0], sizes = [16, 128], strides = [1, 1]} : vector<40x128xf32> to vector<16x128xf32>
    %c8_60 = arith.constant 8 : index
    %c0_61 = arith.constant 0 : index
    %66 = vector.load %arg9[%c8_60, %c0_61] : memref<56x128xf32, #tpu.memory_space<vmem>>, vector<16x128xf32>
    tpu.vector_store %arg9[%c8_60, %c0_61], %65 {strides = array<i32>} : memref<56x128xf32, #tpu.memory_space<vmem>>, vector<16x128xf32>,
    %67 = vector.extract_strided_slice %64 {offsets = [24, 0], sizes = [16, 128], strides = [1, 1]} : vector<40x128xf32> to vector<16x128xf32>
    %c32_62 = arith.constant 32 : index
    %c0_63 = arith.constant 0 : index
    %68 = vector.load %arg9[%c32_62, %c0_63] : memref<56x128xf32, #tpu.memory_space<vmem>>, vector<16x128xf32>
    tpu.vector_store %arg9[%c32_62, %c0_63], %67 {strides = array<i32>} : memref<56x128xf32, #tpu.memory_space<vmem>>, vector<16x128xf32>,
    %c7_64 = arith.constant 7 : index
    %c0_65 = arith.constant 0 : index
    %69 = vector.load %arg9[%c7_64, %c0_65] : memref<56x128xf32, #tpu.memory_space<vmem>>, vector<40x128xf32>
    %70 = arith.truncf %69 : vector<40x128xf32> to vector<40x128xbf16>
    %c0_66 = arith.constant 0 : index
    %c0_67 = arith.constant 0 : index
    %71 = vector.load %arg10[%c0_66, %c0_67] : memref<40x640xbf16, #tpu.memory_space<vmem>>, vector<40x128xbf16>
    tpu.vector_store %arg10[%c0_66, %c0_67], %70 {strides = array<i32>} : memref<40x640xbf16, #tpu.memory_space<vmem>>, vector<40x128xbf16>,
    %c8_68 = arith.constant 8 : index
    %c0_69 = arith.constant 0 : index
    %72 = vector.load %arg9[%c8_68, %c0_69] : memref<56x128xf32, #tpu.memory_space<vmem>>, vector<40x128xf32>
    %73 = arith.truncf %72 : vector<40x128xf32> to vector<40x128xbf16>
    %c0_70 = arith.constant 0 : index
    %c128_71 = arith.constant 128 : index
    %74 = vector.load %arg10[%c0_70, %c128_71] : memref<40x640xbf16, #tpu.memory_space<vmem>>, vector<40x128xbf16>
    tpu.vector_store %arg10[%c0_70, %c128_71], %73 {strides = array<i32>} : memref<40x640xbf16, #tpu.memory_space<vmem>>, vector<40x128xbf16>,
    %c9_72 = arith.constant 9 : index
    %c0_73 = arith.constant 0 : index
    %75 = vector.load %arg9[%c9_72, %c0_73] : memref<56x128xf32, #tpu.memory_space<vmem>>, vector<40x128xf32>
    %76 = arith.truncf %75 : vector<40x128xf32> to vector<40x128xbf16>
    %c0_74 = arith.constant 0 : index
    %c256_75 = arith.constant 256 : index
    %77 = vector.load %arg10[%c0_74, %c256_75] : memref<40x640xbf16, #tpu.memory_space<vmem>>, vector<40x128xbf16>
    tpu.vector_store %arg10[%c0_74, %c256_75], %76 {strides = array<i32>} : memref<40x640xbf16, #tpu.memory_space<vmem>>, vector<40x128xbf16>,
    %c0_76 = arith.constant 0 : index
    %c0_77 = arith.constant 0 : index
    %78 = vector.load %arg10[%c0_76, %c0_77] : memref<40x640xbf16, #tpu.memory_space<vmem>>, vector<40x384xbf16>
    %c0_78 = arith.constant 0 : index
    %c0_79 = arith.constant 0 : index
    %79 = vector.load %arg6[%c0_78, %c0_79] : memref<384x128xbf16, #tpu.memory_space<vmem>>, vector<384x128xbf16>
    %cst_80 = arith.constant dense<0.000000e+00> : vector<40x128xf32>
    %80 = tpu.matmul %78, %79, %cst_80 {dimension_numbers = #tpu.dot_dimension_numbers<[1], [0], [0], [1], [0, 0, 1, 1], [], []>} : vector<40x384xbf16>, vector<384x128xbf16>, vector<40x128xf32> -> vector<40x128xf32>
    %c0_81 = arith.constant 0 : index
    %c0_82 = arith.constant 0 : index
    %81 = vector.load %arg7[%c0_81, %c0_82] : memref<1x128xf32, #tpu.memory_space<vmem>>, vector<1x128xf32>
    %82 = vector.broadcast %81 : vector<1x128xf32> to vector<40x128xf32>
    %83 = arith.addf %80, %82 : vector<40x128xf32>
    %c0_83 = arith.constant 0 : index
    %c0_84 = arith.constant 0 : index
    %c0_85 = arith.constant 0 : index
    %84 = vector.load %arg1[%c0_83, %c0_84, %c0_85] : memref<2x16x128xf32, #tpu.memory_space<vmem>>, vector<1x16x128xf32>
    %85 = vector.shape_cast %84 : vector<1x16x128xf32> to vector<16x128xf32>
    %86 = vector.extract_strided_slice %83 {offsets = [0, 0], sizes = [16, 128], strides = [1, 1]} : vector<40x128xf32> to vector<16x128xf32>
    %87 = arith.addf %85, %86 : vector<16x128xf32>
    %cst_86 = arith.constant 0.000000e+00 : f32
    %88 = vector.broadcast %cst_86 : f32 to vector<16x128xf32>
    %89 = arith.maximumf %87, %88 : vector<16x128xf32>
    %c0_87 = arith.constant 0 : index
    %c0_88 = arith.constant 0 : index
    %c0_89 = arith.constant 0 : index
    %90 = vector.load %arg8[%c0_87, %c0_88, %c0_89] : memref<2x16x128xf32, #tpu.memory_space<vmem>>, vector<1x16x128xf32>
    %91 = vector.shape_cast %90 : vector<1x16x128xf32> to vector<16x128xf32>
    %92 = vector.shape_cast %89 : vector<16x128xf32> to vector<1x16x128xf32>
    tpu.vector_store %arg8[%c0_87, %c0_88, %c0_89], %92 {strides = array<i32>} : memref<2x16x128xf32, #tpu.memory_space<vmem>>, vector<1x16x128xf32>,
    %c1_90 = arith.constant 1 : index
    %c0_91 = arith.constant 0 : index
    %c0_92 = arith.constant 0 : index
    %93 = vector.load %arg1[%c1_90, %c0_91, %c0_92] : memref<2x16x128xf32, #tpu.memory_space<vmem>>, vector<1x16x128xf32>
    %94 = vector.shape_cast %93 : vector<1x16x128xf32> to vector<16x128xf32>
    %95 = vector.extract_strided_slice %83 {offsets = [24, 0], sizes = [16, 128], strides = [1, 1]} : vector<40x128xf32> to vector<16x128xf32>
    %96 = arith.addf %94, %95 : vector<16x128xf32>
    %cst_93 = arith.constant 0.000000e+00 : f32
    %97 = vector.broadcast %cst_93 : f32 to vector<16x128xf32>
    %98 = arith.maximumf %96, %97 : vector<16x128xf32>
    %c1_94 = arith.constant 1 : index
    %c0_95 = arith.constant 0 : index
    %c0_96 = arith.constant 0 : index
    %99 = vector.load %arg8[%c1_94, %c0_95, %c0_96] : memref<2x16x128xf32, #tpu.memory_space<vmem>>, vector<1x16x128xf32>
    %100 = vector.shape_cast %99 : vector<1x16x128xf32> to vector<16x128xf32>
    %101 = vector.shape_cast %98 : vector<16x128xf32> to vector<1x16x128xf32>
    tpu.vector_store %arg8[%c1_94, %c0_95, %c0_96], %101 {strides = array<i32>} : memref<2x16x128xf32, #tpu.memory_space<vmem>>, vector<1x16x128xf32>,
    return
  }
  func.func @transform_0(%arg0: i32) -> (i32, i32, i32) {
    %c0_i32 = arith.constant 0 : i32
    %c0_i32_0 = arith.constant 0 : i32
    %c0_i32_1 = arith.constant 0 : i32
    return %arg0, %c0_i32, %c0_i32_0 : i32, i32, i32
  }
  func.func @transform_1(%arg0: i32) -> (i32, i32) {
    %c0_i32 = arith.constant 0 : i32
    %c0_i32_0 = arith.constant 0 : i32
    %c0_i32_1 = arith.constant 0 : i32
    return %c0_i32, %c0_i32_0 : i32, i32
  }
  func.func @transform_2(%arg0: i32) -> (i32, i32) {
    %c0_i32 = arith.constant 0 : i32
    %c0_i32_0 = arith.constant 0 : i32
    %c0_i32_1 = arith.constant 0 : i32
    return %c0_i32, %c0_i32_0 : i32, i32
  }
  func.func @transform_3(%arg0: i32) -> (i32, i32) {
    %c0_i32 = arith.constant 0 : i32
    %c0_i32_0 = arith.constant 0 : i32
    %c0_i32_1 = arith.constant 0 : i32
    return %c0_i32, %c0_i32_0 : i32, i32
  }
  func.func @transform_4(%arg0: i32) -> (i32, i32) {
    %c0_i32 = arith.constant 0 : i32
    %c0_i32_0 = arith.constant 0 : i32
    %c0_i32_1 = arith.constant 0 : i32
    return %c0_i32, %c0_i32_0 : i32, i32
  }
  func.func @transform_5(%arg0: i32) -> (i32, i32) {
    %c0_i32 = arith.constant 0 : i32
    %c0_i32_0 = arith.constant 0 : i32
    %c0_i32_1 = arith.constant 0 : i32
    return %c0_i32, %c0_i32_0 : i32, i32
  }
  func.func @transform_6(%arg0: i32) -> (i32, i32) {
    %c0_i32 = arith.constant 0 : i32
    %c0_i32_0 = arith.constant 0 : i32
    %c0_i32_1 = arith.constant 0 : i32
    return %c0_i32, %c0_i32_0 : i32, i32
  }
  func.func @transform_7(%arg0: i32) -> (i32, i32, i32) {
    %c0_i32 = arith.constant 0 : i32
    %c0_i32_0 = arith.constant 0 : i32
    %c0_i32_1 = arith.constant 0 : i32
    return %arg0, %c0_i32, %c0_i32_0 : i32, i32, i32
  }
}

</mosaic_0001>

<bundles_post_ra>
// kernel: tpu_custom_call.1
= control target key start
LH: loop header
LB: loop body
LE: loop exit
PB: predicated region body
PF: predicated region fallthrough
CT: control target
= control target key end

     0   :  { %12 = vsyncpa [#allocation5], 0  ;;  %s3885_s0 = inlined_call_operand.hbm [shape: f32[2,16,128], index: 0, kind: input, shape index: {}]   ;;  %s3886_s1 = inlined_call_operand.hbm [shape: bf16[640,256], index: 1, kind: input, shape index: {}]   ;;  %s3887_s2 = inlined_call_operand.hbm [shape: f32[1,256], index: 2, kind: input, shape index: {}]   ;;  %s3888_s3 = inlined_call_operand.hbm [shape: bf16[640,256], index: 3, kind: input, shape index: {}]   ;;  %s3889_s4 = inlined_call_operand.vmem [shape: f32[1,256], index: 4, kind: input, shape index: {}]   ;;  %s3890_s5 = inlined_call_operand.hbm [shape: bf16[384,128], index: 5, kind: input, shape index: {}]   ;;  %s3891_s6 = inlined_call_operand.vmem [shape: f32[1,128], index: 6, kind: input, shape index: {}]   ;;  %s3892_s7 = inlined_call_operand.hbm [shape: f32[2,16,128], index: 7, kind: output, shape index: {}]  }
   0x1   :  { %13 = vsyncpa [#allocation8], 0 }
   0x2   :  { %14 = vsyncpa [#allocation11], 0 }
   0x3   :  { %15 = vsyncpa [#allocation6], 0  ;;  %s33_s26 = sshll.u32 %s3886_s1, 4  ;;  %s3508_s27 = smov [#allocation7]   ;;  %s34_s26 = int_to_ptr.hbm [resolvable:$true] %s33_s26 }
   0x4   :  { %s35_s28 = sshll.u32 %s3508_s27, 4  ;;  %s57_s8 = sshll.u32 %s3888_s3, 4  ;;  %s36_s28 = int_to_ptr.vmem [resolvable:$true] %s35_s28  ;;  %s58_s8 = int_to_ptr.hbm [resolvable:$true] %s57_s8 }
   0x5   :  { %s3509_s9 = smov 128   ;;  %s3510_s10 = smov 8  }
   0x6   :  { %41 = dma.hbm_to_vmem [thread:$0]  %s34_s26, 10240, %s36_s28, [#allocation8], %s3509_s9, %s3509_s9, %s3510_s10  }
   0x7   :  { %s3511_s11 = smov [#allocation10]   ;;  %s20_s1 = sshll.u32 %s3885_s0, 4  ;;  %s21_s1 = int_to_ptr.hbm [resolvable:$true] %s20_s1 }
   0x8   :  { %s59_s12 = sshll.u32 %s3511_s11, 4  ;;  %s47_s16 = sshll.u32 %s3887_s2, 4  ;;  %s60_s12 = int_to_ptr.vmem [resolvable:$true] %s59_s12  ;;  %s48_s16 = int_to_ptr.hbm [resolvable:$true] %s47_s16 }
   0x9   :  { %65 = dma.hbm_to_vmem [thread:$0]  %s58_s8, 10240, %s60_s12, [#allocation11], %s3509_s9, %s3509_s9, %s3510_s10  }
   0xa   :  { %s3512_s17 = smov [#allocation4]   ;;  %s3513_s19 = smov [#allocation9]  }
   0xb   :  { %s22_s18 = sshll.u32 %s3512_s17, 4  ;;  %s49_s0 = sshll.u32 %s3513_s19, 4  ;;  %s23_s18 = int_to_ptr.vmem [resolvable:$true] %s22_s18  ;;  %s50_s0 = int_to_ptr.vmem [resolvable:$true] %s49_s0 }
   0xc   :  { %28 = dma.hbm_to_vmem [thread:$0]  %s21_s1, 512, %s23_s18, [#allocation5], %s3509_s9, %s3509_s9, %s3510_s10  }
   0xd   :  { %s72_s22 = sshll.u32 %s3890_s5, 4  ;;  %s3514_s23 = smov [#allocation12]   ;;  %s73_s22 = int_to_ptr.hbm [resolvable:$true] %s72_s22 }
   0xe   :  { %52 = dma.hbm_to_vmem [thread:$0]  %s48_s16, 32, %s50_s0, [#allocation8]  }
   0xf   :  { %s74_s24 = sshll.u32 %s3514_s23, 4  ;;  %s3515_s2 = smov 64   ;;  %s75_s24 = int_to_ptr.vmem [resolvable:$true] %s74_s24 }
  0x10   :  { %s3516_s25 = smov 4  }
  0x11   :  { %80 = dma.hbm_to_vmem [thread:$0]  %s73_s22, 3072, %s75_s24, [#allocation11], %s3515_s2, %s3515_s2, %s3516_s25  }
  0x12   :  { %3500 = dma.done.wait [#allocation5], 512  }
  0x13   :  { %3501 = vsyncadd [#allocation5], 4294966784 }
  0x14   :  { %3502 = dma.done.wait [#allocation8], 10272  }
  0x15   :  { %3503 = vsyncadd [#allocation8], 4294957024 }
  0x16   :  { %3504 = dma.done.wait [#allocation11], 13312  }
  0x17   :  { %3505 = vsyncadd [#allocation11], 4294953984  ;;  %v3517_v0 = vmov 0.0   ;;  %v2383_v1 = vld [vmem:[#allocation7 + $0x70] sm:$0xf]  ;;  %v110_v50 = vld [vmem:[#allocation4] sm:$0xff] }
  0x18   :  { %103 = vst [vmem:[#allocation2] sm:$0xff] %v3517_v0  ;;  %v3150_v2 = vld [vmem:[#allocation7 + $0x74] sm:$0xf0]  ;;  %v2447_v3 = vld [vmem:[#allocation7 + $0xf0] sm:$0xf]  ;;  %v111_v53 = vld [vmem:[#allocation4 + $0x8] sm:$0xff]  ;;  %v154_v54 = vpack.c.bf16 %v110_v50, %v110_v50 }
  0x19   :  { %106 = vst [vmem:[#allocation2 + $0x18] sm:$0xff] %v3517_v0  ;;  %v2384_v4 = vor.u32 %v3150_v2, %v2383_v1  ;;  %v3166_v5 = vld [vmem:[#allocation7 + $0xf4] sm:$0xf0]  ;;  %v2511_v6 = vld [vmem:[#allocation7 + $0x170] sm:$0xf]  ;;  %v155_v55 = vpack.c.bf16 %v111_v53, %v111_v53  ;;  %s2270_s8 = sshll.u32 %s3892_s7, 4  ;;  %s2271_s8 = int_to_ptr.hbm [resolvable:$true] %s2270_s8 }
  0x1a   :  { %109 = vst [vmem:[#allocation2 + $0x30] sm:$0xff] %v3517_v0  ;;  %v3182_v7 = vld [vmem:[#allocation7 + $0x174] sm:$0xf0]  ;;  %v2448_v8 = vor.u32 %v3166_v5, %v2447_v3  ;;  %v2375_v10 = vld [vmem:[#allocation7 + $0x60] sm:$0xf]  ;;  %v3584_v62 = vld [vmem:[#allocation4 + $0x10] sm:$0xff] }
  0x1b   :  { %v2512_v9 = vor.u32 %v3182_v7, %v2511_v6  ;;  %v3148_v11 = vld [vmem:[#allocation7 + $0x64] sm:$0xf0]  ;;  %v2439_v12 = vld [vmem:[#allocation7 + $0xe0] sm:$0xf]  ;;  %765 = vmatpush.bf16.msra.mxu0 %v2384_v4  ;;  %3335 = vmatpush.bf16.msra.mxu3 %v2384_v4  ;;  %v2367_v19 = vld [vmem:[#allocation7 + $0x50] sm:$0xf] }
  0x1c   :  { %v2376_v13 = vor.u32 %v3148_v11, %v2375_v10  ;;  %v3164_v14 = vld [vmem:[#allocation7 + $0xe4] sm:$0xf0]  ;;  %v2503_v15 = vld [vmem:[#allocation7 + $0x160] sm:$0xf]  ;;  %787 = vmatpush.bf16.msra.mxu1 %v2448_v8  ;;  %v3146_v20 = vld [vmem:[#allocation7 + $0x54] sm:$0xf0] }
  0x1d   :  { %v3180_v16 = vld [vmem:[#allocation7 + $0x164] sm:$0xf0]  ;;  %809 = vmatpush.bf16.msra.mxu2 %v2512_v9  ;;  %v2440_v17 = vor.u32 %v3164_v14, %v2439_v12  ;;  %v2431_v21 = vld [vmem:[#allocation7 + $0xd0] sm:$0xf]  ;;  %v3162_v22 = vld [vmem:[#allocation7 + $0xd4] sm:$0xf0]  ;;  %v2368_v25 = vor.u32 %v3146_v20, %v2367_v19 }
  0x1e   :  { %v2504_v18 = vor.u32 %v3180_v16, %v2503_v15  ;;  %v2495_v23 = vld [vmem:[#allocation7 + $0x150] sm:$0xf]  ;;  %v3178_v24 = vld [vmem:[#allocation7 + $0x154] sm:$0xf0]  ;;  %v2432_v26 = vor.u32 %v3162_v22, %v2431_v21  ;;  %v2359_v28 = vld [vmem:[#allocation7 + $0x40] sm:$0xf] }
  0x1f   :  { %766 = vmatpush.bf16.msra.mxu0 %v2376_v13  ;;  %3336 = vmatpush.bf16.msra.mxu3 %v2376_v13  ;;  %v2496_v27 = vor.u32 %v3178_v24, %v2495_v23  ;;  %v3144_v29 = vld [vmem:[#allocation7 + $0x44] sm:$0xf0]  ;;  %v2423_v30 = vld [vmem:[#allocation7 + $0xc0] sm:$0xf]  ;;  %v2351_v37 = vld [vmem:[#allocation7 + $0x30] sm:$0xf] }
  0x20   :  { %788 = vmatpush.bf16.msra.mxu1 %v2440_v17  ;;  %v3160_v31 = vld [vmem:[#allocation7 + $0xc4] sm:$0xf0]  ;;  %v2487_v32 = vld [vmem:[#allocation7 + $0x140] sm:$0xf]  ;;  %v2360_v34 = vor.u32 %v3144_v29, %v2359_v28  ;;  %v3142_v38 = vld [vmem:[#allocation7 + $0x34] sm:$0xf0] }
  0x21   :  { %810 = vmatpush.bf16.msra.mxu2 %v2504_v18  ;;  %v3176_v33 = vld [vmem:[#allocation7 + $0x144] sm:$0xf0]  ;;  %v2424_v35 = vor.u32 %v3160_v31, %v2423_v30  ;;  %v2415_v39 = vld [vmem:[#allocation7 + $0xb0] sm:$0xf]  ;;  %v3158_v40 = vld [vmem:[#allocation7 + $0xb4] sm:$0xf0]  ;;  %v2352_v43 = vor.u32 %v3142_v38, %v2351_v37 }
  0x22   :  { %v2488_v36 = vor.u32 %v3176_v33, %v2487_v32  ;;  %v2479_v41 = vld [vmem:[#allocation7 + $0x130] sm:$0xf]  ;;  %v3174_v42 = vld [vmem:[#allocation7 + $0x134] sm:$0xf0]  ;;  %v2343_v44 = vld [vmem:[#allocation7 + $0x20] sm:$0xf]  ;;  %v2416_v46 = vor.u32 %v3158_v40, %v2415_v39 }
  0x23   :  { %767 = vmatpush.bf16.msra.mxu0 %v2368_v25  ;;  %3337 = vmatpush.bf16.msra.mxu3 %v2368_v25  ;;  %v3140_v45 = vld [vmem:[#allocation7 + $0x24] sm:$0xf0]  ;;  %v2480_v47 = vor.u32 %v3174_v42, %v2479_v41  ;;  %v2407_v48 = vld [vmem:[#allocation7 + $0xa0] sm:$0xf]  ;;  %112 = vst [vmem:[#allocation2 + $0x8] sm:$0xff] %v110_v50  ;;  %v3592_v9 = vld [vmem:[#allocation4 + $0x18] sm:$0xff] }
  0x24   :  { %789 = vmatpush.bf16.msra.mxu1 %v2432_v26  ;;  %v3156_v49 = vld [vmem:[#allocation7 + $0xa4] sm:$0xf0]  ;;  %v2471_v51 = vld [vmem:[#allocation7 + $0x120] sm:$0xf]  ;;  %113 = vst [vmem:[#allocation2 + $0x10] sm:$0xff] %v111_v53  ;;  %v2344_v56 = vor.u32 %v3140_v45, %v2343_v44  ;;  %v3518_v22 = vmov 0.0|0.0  }
  0x25   :  { %811 = vmatpush.bf16.msra.mxu2 %v2496_v27  ;;  %v3172_v52 = vld [vmem:[#allocation7 + $0x124] sm:$0xf0]  ;;  %v2335_v57 = vld [vmem:[#allocation7 + $0x10] sm:$0xf]  ;;  %v3138_v58 = vld [vmem:[#allocation7 + $0x14] sm:$0xf0]  ;;  %v2408_v59 = vor.u32 %v3156_v49, %v2407_v48 }
  0x26   :  { %159 = vst [vmem:[#allocation3 + $0x8] sm:$0xf] %v154_v54  ;;  %v2472_v60 = vor.u32 %v3172_v52, %v2471_v51  ;;  %v2399_v61 = vld [vmem:[#allocation7 + $0x90] sm:$0xf]  ;;  %v3154_v63 = vld [vmem:[#allocation7 + $0x94] sm:$0xf0]  ;;  %v2336_v6 = vor.u32 %v3138_v58, %v2335_v57 }
  0x27   :  { %768 = vmatpush.bf16.msra.mxu0 %v2360_v34  ;;  %3338 = vmatpush.bf16.msra.mxu3 %v2360_v34  ;;  %160 = vst [vmem:[#allocation3 + $0x1c] sm:$0xf] %v155_v55  ;;  %v2463_v0 = vld [vmem:[#allocation7 + $0x110] sm:$0xf]  ;;  %v3170_v1 = vld [vmem:[#allocation7 + $0x114] sm:$0xf0]  ;;  %v2400_v10 = vor.u32 %v3154_v63, %v2399_v61 }
  0x28   :  { %790 = vmatpush.bf16.msra.mxu1 %v2424_v35  ;;  %v2327_v2 = vld [vmem:[#allocation7] sm:$0xf]  ;;  %v3136_v3 = vld [vmem:[#allocation7 + $0x4] sm:$0xf0]  ;;  %117 = vst [vmem:[#allocation2 + $0x20] sm:$0xff] %v3584_v62  ;;  %v2464_v11 = vor.u32 %v3170_v1, %v2463_v0  ;;  %v157_v0 = vpack.c.bf16 %v3584_v62, %v3584_v62 }
  0x29   :  { %812 = vmatpush.bf16.msra.mxu2 %v2488_v36  ;;  %v3586_v4 = vld [vmem:[#allocation7 + $0x80] sm:$0xf]  ;;  %v3588_v5 = vld [vmem:[#allocation7 + $0x84] sm:$0xf0]  ;;  %v3595_v12 = vld [vmem:[#allocation7 + $0x1f0] sm:$0xf]  ;;  %v2328_v28 = vor.u32 %v3136_v3, %v2327_v2 }
  0x2a   :  { %v3590_v7 = vld [vmem:[#allocation7 + $0x100] sm:$0xf]  ;;  %v3168_v8 = vld [vmem:[#allocation7 + $0x104] sm:$0xf0]  ;;  %v3597_v13 = vld [vmem:[#allocation7 + $0x1f4] sm:$0xf0]  ;;  %v2392_v29 = vor.u32 %v3588_v5, %v3586_v4 }
  0x2b   :  { %769 = vmatpush.bf16.msra.mxu0 %v2352_v43  ;;  %3339 = vmatpush.bf16.msra.mxu3 %v2352_v43  ;;  %v119_v14 = vld [vmem:[#allocation2 + $0x6] sm:$0xff]  ;;  %v3149_v16 = vld [vmem:[#allocation7 + $0x74] sm:$0xf]  ;;  %118 = vst [vmem:[#allocation2 + $0x28] sm:$0xff] %v3592_v9  ;;  %v2385_v21 = vld [vmem:[#allocation7 + $0x78] sm:$0xf0]  ;;  %v2456_v33 = vor.u32 %v3168_v8, %v3590_v7  ;;  %v2576_v39 = vor.u32 %v3597_v13, %v3595_v12 }
  0x2c   :  { %791 = vmatpush.bf16.msra.mxu1 %v2416_v46  ;;  %v134_v15 = vld [vmem:[#allocation2 + $0x7] sm:$0xff]  ;;  %v124_v18 = vpack.c.bf16 %v119_v14, %v119_v14  ;;  %v135_v19 = vld [vmem:[#allocation2 + $0xf] sm:$0xff]  ;;  %161 = vst [vmem:[#allocation3 + $0x30] sm:$0xf] %v3518_v22  ;;  %v136_v32 = vld [vmem:[#allocation2 + $0x17] sm:$0xff]  ;;  %v2388_v40 = vor.u32 %v3149_v16, %v2385_v21 }
  0x2d   :  { %813 = vmatpush.bf16.msra.mxu2 %v2480_v47  ;;  %v120_v17 = vld [vmem:[#allocation2 + $0xe] sm:$0xff]  ;;  %v139_v20 = vpack.c.bf16 %v134_v15, %v134_v15  ;;  %v140_v24 = vpack.c.bf16 %v135_v19, %v135_v19  ;;  %v2295_v25 = vld [vmem:[#allocation3 + $0x8] sm:$0xf]  ;;  %v121_v31 = vld [vmem:[#allocation2 + $0x16] sm:$0xff]  ;;  %v141_v36 = vpack.c.bf16 %v136_v32, %v136_v32  ;;  %162 = vst [vmem:[#allocation3 + $0x44] sm:$0xf] %v157_v0 }
  0x2e   :  { %v125_v23 = vpack.c.bf16 %v120_v17, %v120_v17  ;;  %v2639_v26 = vld [vmem:[#allocation7 + $0x270] sm:$0xf]  ;;  %v3214_v27 = vld [vmem:[#allocation7 + $0x274] sm:$0xf0]  ;;  %129 = vst [vmem:[#allocation3] sm:$0xf] %v124_v18  ;;  %v126_v35 = vpack.c.bf16 %v121_v31, %v121_v31 }
  0x2f   :  { %770 = vmatpush.bf16.msra.mxu0 %v2344_v56  ;;  %3340 = vmatpush.bf16.msra.mxu3 %v2344_v56  ;;  %v3128_v30 = vld [vmem:[#allocation3 + $0x18] sm:$0xf0]  ;;  %v2567_v34 = vld [vmem:[#allocation7 + $0x1e0] sm:$0xf]  ;;  %v3165_v37 = vld [vmem:[#allocation7 + $0xf4] sm:$0xf]  ;;  %v2640_v43 = vor.u32 %v3214_v27, %v2639_v26 }
  0x30   :  { %792 = vmatpush.bf16.msra.mxu1 %v2408_v59  ;;  %130 = vst [vmem:[#allocation3 + $0x14] sm:$0xf] %v125_v23  ;;  %v2449_v38 = vld [vmem:[#allocation7 + $0xf8] sm:$0xf0]  ;;  %v3196_v41 = vld [vmem:[#allocation7 + $0x1e4] sm:$0xf0]  ;;  %v3606_v48 = vor.u32 %v3128_v30, %v2295_v25 }
  0x31   :  { %814 = vmatpush.bf16.msra.mxu2 %v2472_v60  ;;  %144 = vst [vmem:[#allocation3 + $0x4] sm:$0xf] %v139_v20  ;;  %v3147_v42 = vld [vmem:[#allocation7 + $0x64] sm:$0xf]  ;;  %v2377_v44 = vld [vmem:[#allocation7 + $0x68] sm:$0xf0]  ;;  %v2452_v47 = vor.u32 %v3165_v37, %v2449_v38  ;;  %v2568_v60 = vor.u32 %v3196_v41, %v2567_v34  ;;  %v158_v20 = vpack.c.bf16 %v3592_v9, %v3592_v9 }
  0x32   :  { %145 = vst [vmem:[#allocation3 + $0x18] sm:$0xf] %v140_v24  ;;  %v122_v45 = vld [vmem:[#allocation2 + $0x1e] sm:$0xff]  ;;  %v123_v50 = vld [vmem:[#allocation2 + $0x26] sm:$0xff]  ;;  %v3194_v54 = vld [vmem:[#allocation7 + $0x1d4] sm:$0xf0]  ;;  %v2380_v61 = vor.u32 %v3147_v42, %v2377_v44 }
  0x33   :  { %771 = vmatpush.bf16.msra.mxu0 %v2336_v6  ;;  %3341 = vmatpush.bf16.msra.mxu3 %v2336_v6  ;;  %v137_v46 = vld [vmem:[#allocation2 + $0x1f] sm:$0xff]  ;;  %v138_v51 = vld [vmem:[#allocation2 + $0x27] sm:$0xff]  ;;  %v127_v52 = vpack.c.bf16 %v122_v45, %v122_v45  ;;  %131 = vst [vmem:[#allocation3 + $0x28] sm:$0xf] %v126_v35  ;;  %v3145_v56 = vld [vmem:[#allocation7 + $0x54] sm:$0xf]  ;;  %v128_v57 = vpack.c.bf16 %v123_v50, %v123_v50 }
  0x34   :  { %793 = vmatpush.bf16.msra.mxu1 %v2400_v10  ;;  %v2631_v49 = vld [vmem:[#allocation7 + $0x260] sm:$0xf]  ;;  %v2559_v53 = vld [vmem:[#allocation7 + $0x1d0] sm:$0xf]  ;;  %v3212_v55 = vld [vmem:[#allocation7 + $0x264] sm:$0xf0]  ;;  %v143_v58 = vpack.c.bf16 %v138_v51, %v138_v51  ;;  %v142_v59 = vpack.c.bf16 %v137_v46, %v137_v46 }
  0x35   :  { %815 = vmatpush.bf16.msra.mxu2 %v2464_v11  ;;  %146 = vst [vmem:[#allocation3 + $0x2c] sm:$0xf] %v141_v36  ;;  %v2369_v63 = vld [vmem:[#allocation7 + $0x58] sm:$0xf0]  ;;  %v3163_v1 = vld [vmem:[#allocation7 + $0xe4] sm:$0xf]  ;;  %v2632_v5 = vor.u32 %v3212_v55, %v2631_v49  ;;  %v2560_v14 = vor.u32 %v3194_v54, %v2559_v53 }
  0x36   :  { %132 = vst [vmem:[#allocation3 + $0x3c] sm:$0xf] %v127_v52  ;;  %v2287_v2 = vld [vmem:[#allocation3] sm:$0xf]  ;;  %v2441_v3 = vld [vmem:[#allocation7 + $0xe8] sm:$0xf0]  ;;  %v2372_v15 = vor.u32 %v3145_v56, %v2369_v63 }
  0x37   :  { %772 = vmatpush.bf16.msra.mxu0 %v2328_v28  ;;  %3342 = vmatpush.bf16.msra.mxu3 %v2328_v28  ;;  %133 = vst [vmem:[#allocation3 + $0x50] sm:$0xf] %v128_v57  ;;  %v3127_v4 = vld [vmem:[#allocation3 + $0x10] sm:$0xf0]  ;;  %v2444_v7 = vor.u32 %v3163_v1, %v2441_v3  ;;  %v2551_v11 = vld [vmem:[#allocation7 + $0x1c0] sm:$0xf] }
  0x38   :  { %794 = vmatpush.bf16.msra.mxu1 %v2392_v29  ;;  %148 = vst [vmem:[#allocation3 + $0x54] sm:$0xf] %v143_v58  ;;  %v2623_v6 = vld [vmem:[#allocation7 + $0x250] sm:$0xf]  ;;  %v3611_v8 = vor.u32 %v3127_v4, %v2287_v2  ;;  %v3125_v10 = vld [vmem:[#allocation3 + $0x4] sm:$0xf] }
  0x39   :  { %816 = vmatpush.bf16.msra.mxu2 %v2456_v33  ;;  %v3192_v12 = vld [vmem:[#allocation7 + $0x1c4] sm:$0xf0]  ;;  %v3210_v13 = vld [vmem:[#allocation7 + $0x254] sm:$0xf0]  ;;  %147 = vst [vmem:[#allocation3 + $0x40] sm:$0xf] %v142_v59 }
  0x3a   :  { %v2289_v62 = vld [vmem:[#allocation3 + $0x14] sm:$0xf0]  ;;  %v2315_v16 = vld [vmem:[#allocation3 + $0x30] sm:$0xf]  ;;  %773 = vmatmul.bf16.vlgmr.msra.gmra.mxu0 %v3611_v8  ;;  %v3143_v18 = vld [vmem:[#allocation7 + $0x44] sm:$0xf]  ;;  %v2624_v23 = vor.u32 %v3210_v13, %v2623_v6  ;;  %v2552_v28 = vor.u32 %v3192_v12, %v2551_v11 }
  0x3b   :  { %831 = vmatpush.bf16.msrb.mxu3 %v2576_v39  ;;  %853 = vmatpush.bf16.msrb.mxu0 %v2640_v43  ;;  %v3614_v17 = vor.u32 %v3125_v10, %v2289_v62  ;;  %1043 = vst [vmem:[#allocation3 + $0x30] sm:$0xf] %v3518_v22  ;;  %v2361_v19 = vld [vmem:[#allocation7 + $0x48] sm:$0xf0]  ;;  %v3619_v21 = vld [vmem:[#allocation7 + $0x1b0] sm:$0xf] }
  0x3c   :  { %875 = vmatpush.bf16.msrb.mxu1 %v2388_v40  ;;  %817 = vmatmul.bf16.vlgmr.msra.gmra.mxu2 %v3606_v48  ;;  %v2615_v24 = vld [vmem:[#allocation7 + $0x240] sm:$0xf]  ;;  %v3208_v25 = vld [vmem:[#allocation7 + $0x244] sm:$0xf0]  ;;  %v3161_v26 = vld [vmem:[#allocation7 + $0xd4] sm:$0xf]  ;;  %v2364_v29 = vor.u32 %v3143_v18, %v2361_v19 }
  0x3d   :  { %897 = vmatpush.bf16.msrb.mxu2 %v2452_v47  ;;  %795 = vmatmul.bf16.vlgmr.msra.gmra.mxu1 %v3614_v17  ;;  %v2433_v27 = vld [vmem:[#allocation7 + $0xd8] sm:$0xf0]  ;;  %v3190_v22 = vld [vmem:[#allocation7 + $0x1b4] sm:$0xf0]  ;;  %v3622_v30 = vld [vmem:[#allocation7 + $0x230] sm:$0xf]  ;;  %v2616_v36 = vor.u32 %v3208_v25, %v2615_v24 }
  0x3e   :  { %v3141_v31 = vld [vmem:[#allocation7 + $0x34] sm:$0xf]  ;;  %v2436_v32 = vor.u32 %v3161_v26, %v2433_v27  ;;  %v2353_v33 = vld [vmem:[#allocation7 + $0x38] sm:$0xf0]  ;;  %163 = vst [vmem:[#allocation3 + $0x58] sm:$0xf] %v158_v20  ;;  %v2544_v41 = vor.u32 %v3190_v22, %v3619_v21 }
  0x3f   :  { %832 = vmatpush.bf16.msrb.mxu3 %v2568_v60  ;;  %854 = vmatpush.bf16.msrb.mxu0 %v2632_v5  ;;  %v3624_v9 = vld [vmem:[#allocation3 + $0x50] sm:$0xff]  ;;  %v3206_v37 = vld [vmem:[#allocation7 + $0x234] sm:$0xf0]  ;;  %v3159_v40 = vld [vmem:[#allocation7 + $0xc4] sm:$0xf]  ;;  %v2356_v51 = vor.u32 %v3141_v31, %v2353_v33 }
  0x40   :  { %876 = vmatpush.bf16.msrb.mxu1 %v2380_v61  ;;  %v164_v34 = vld [vmem:[#allocation2 + $0x9] sm:$0xff]  ;;  %v330_v35 = vunpack.c.l.b16 %v3624_v9  ;;  %v165_v38 = vld [vmem:[#allocation2 + $0x11] sm:$0xff]  ;;  %v3133_v42 = vld [vmem:[#allocation3 + $0x40] sm:$0xf0]  ;;  %v2608_v54 = vor.u32 %v3206_v37, %v3622_v30 }
  0x41   :  { %898 = vmatpush.bf16.msrb.mxu2 %v2444_v7  ;;  %v169_v39 = vpack.c.bf16 %v164_v34, %v164_v34  ;;  %v2535_v43 = vld [vmem:[#allocation7 + $0x1a0] sm:$0xf]  ;;  %v3188_v44 = vld [vmem:[#allocation7 + $0x1a4] sm:$0xf0]  ;;  %v170_v45 = vpack.c.bf16 %v165_v38, %v165_v38  ;;  %v2425_v46 = vld [vmem:[#allocation7 + $0xc8] sm:$0xf0]  ;;  %v3632_v59 = vor.u32 %v3133_v42, %v2315_v16 }
  0x42   :  { %v3628_v47 = vpack.c.b16 %v330_v35, %v330_v35  ;;  %v2307_v49 = vld [vmem:[#allocation3 + $0x28] sm:$0xf]  ;;  %v3132_v50 = vld [vmem:[#allocation3 + $0x38] sm:$0xf0]  ;;  %v2428_v52 = vor.u32 %v3159_v40, %v2425_v46  ;;  %v2345_v55 = vld [vmem:[#allocation7 + $0x28] sm:$0xf0]  ;;  %v2536_v10 = vor.u32 %v3188_v44, %v2535_v43 }
  0x43   :  { %833 = vmatpush.bf16.msrb.mxu3 %v2560_v14  ;;  %855 = vmatpush.bf16.msrb.mxu0 %v2624_v23  ;;  %174 = vst [vmem:[#allocation3 + $0xc] sm:$0xf] %v169_v39  ;;  %v3139_v53 = vld [vmem:[#allocation7 + $0x24] sm:$0xf]  ;;  %v168_v56 = vld [vmem:[#allocation2 + $0x29] sm:$0xff]  ;;  %v180_v12 = vld [vmem:[#allocation2 + $0x12] sm:$0xff]  ;;  %v3634_v14 = vor.u32 %v3132_v50, %v2307_v49 }
  0x44   :  { %877 = vmatpush.bf16.msrb.mxu1 %v2372_v15  ;;  %175 = vst [vmem:[#allocation3 + $0x20] sm:$0xf] %v170_v45  ;;  %v179_v57 = vld [vmem:[#allocation2 + $0xa] sm:$0xff]  ;;  %782 = vmatmul.bf16.vlgmr.msra.gmra.mxu3 %v3628_v47  ;;  %v3130_v58 = vld [vmem:[#allocation3 + $0x2c] sm:$0xf]  ;;  %v173_v61 = vpack.c.bf16 %v168_v56, %v168_v56  ;;  %v2348_v11 = vor.u32 %v3139_v53, %v2345_v55  ;;  %v166_v62 = vld [vmem:[#allocation2 + $0x19] sm:$0xff] }
  0x45   :  { %899 = vmatpush.bf16.msrb.mxu2 %v2436_v32  ;;  %v2599_v60 = vld [vmem:[#allocation7 + $0x220] sm:$0xf]  ;;  %v3157_v63 = vld [vmem:[#allocation7 + $0xb4] sm:$0xf]  ;;  %v2417_v0 = vld [vmem:[#allocation7 + $0xb8] sm:$0xf0]  ;;  %v184_v1 = vpack.c.bf16 %v179_v57, %v179_v57  ;;  %v185_v16 = vpack.c.bf16 %v180_v12, %v180_v12  ;;  %v171_v19 = vpack.c.bf16 %v166_v62, %v166_v62 }
  0x46   :  { %v2309_v2 = vld [vmem:[#allocation3 + $0x3c] sm:$0xf0]  ;;  %v2527_v3 = vld [vmem:[#allocation7 + $0x190] sm:$0xf]  ;;  %v3186_v4 = vld [vmem:[#allocation7 + $0x194] sm:$0xf0]  ;;  %v2420_v6 = vor.u32 %v3157_v63, %v2417_v0 }
  0x47   :  { %834 = vmatpush.bf16.msrb.mxu3 %v2552_v28  ;;  %856 = vmatpush.bf16.msrb.mxu0 %v2616_v36  ;;  %v3204_v5 = vld [vmem:[#allocation7 + $0x224] sm:$0xf0]  ;;  %v3137_v7 = vld [vmem:[#allocation7 + $0x14] sm:$0xf]  ;;  %178 = vst [vmem:[#allocation3 + $0x5c] sm:$0xf] %v173_v61  ;;  %v3637_v21 = vor.u32 %v3130_v58, %v2309_v2  ;;  %v2528_v28 = vor.u32 %v3186_v4, %v2527_v3 }
  0x48   :  { %878 = vmatpush.bf16.msrb.mxu1 %v2364_v29  ;;  %v3155_v13 = vld [vmem:[#allocation7 + $0xa4] sm:$0xf]  ;;  %v2337_v15 = vld [vmem:[#allocation7 + $0x18] sm:$0xf0]  ;;  %189 = vst [vmem:[#allocation3 + $0x10] sm:$0xf] %v184_v1  ;;  %v2600_v20 = vor.u32 %v3204_v5, %v2599_v60 }
  0x49   :  { %900 = vmatpush.bf16.msrb.mxu2 %v2428_v52  ;;  %v2409_v18 = vld [vmem:[#allocation7 + $0xa8] sm:$0xf0]  ;;  %v2519_v23 = vld [vmem:[#allocation7 + $0x180] sm:$0xf]  ;;  %v3184_v24 = vld [vmem:[#allocation7 + $0x184] sm:$0xf0]  ;;  %v2340_v22 = vor.u32 %v3137_v7, %v2337_v15 }
  0x4a   :  { %v2591_v25 = vld [vmem:[#allocation7 + $0x210] sm:$0xf]  ;;  %v3202_v26 = vld [vmem:[#allocation7 + $0x214] sm:$0xf0]  ;;  %190 = vst [vmem:[#allocation3 + $0x24] sm:$0xf] %v185_v16  ;;  %v2412_v27 = vor.u32 %v3155_v13, %v2409_v18  ;;  %778 = vmatmul.bf16.gmra.mxu0 %v3634_v14  ;;  %v2520_v50 = vor.u32 %v3184_v24, %v2519_v23 }
  0x4b   :  { %835 = vmatpush.bf16.msrb.mxu3 %v2544_v41  ;;  %857 = vmatpush.bf16.msrb.mxu0 %v2608_v54  ;;  %v3181_v29 = vld [vmem:[#allocation7 + $0x174] sm:$0xf]  ;;  %v2401_v31 = vld [vmem:[#allocation7 + $0x98] sm:$0xf0]  ;;  %v3135_v32 = vld [vmem:[#allocation7 + $0x4] sm:$0xf]  ;;  %v2592_v40 = vor.u32 %v3202_v26, %v2591_v25 }
  0x4c   :  { %879 = vmatpush.bf16.msrb.mxu1 %v2356_v51  ;;  %822 = vmatmul.bf16.gmra.mxu2 %v3632_v59  ;;  %v3153_v30 = vld [vmem:[#allocation7 + $0x94] sm:$0xf]  ;;  %v2583_v33 = vld [vmem:[#allocation7 + $0x200] sm:$0xf]  ;;  %v3200_v34 = vld [vmem:[#allocation7 + $0x204] sm:$0xf0] }
  0x4d   :  { %901 = vmatpush.bf16.msrb.mxu2 %v2420_v6  ;;  %v2329_v35 = vld [vmem:[#allocation7 + $0x8] sm:$0xf0]  ;;  %176 = vst [vmem:[#allocation3 + $0x34] sm:$0xf] %v171_v19  ;;  %v181_v37 = vld [vmem:[#allocation2 + $0x1a] sm:$0xff]  ;;  %800 = vmatmul.bf16.gmra.mxu1 %v3637_v21  ;;  %v2404_v44 = vor.u32 %v3153_v30, %v2401_v31  ;;  %v2584_v60 = vor.u32 %v3200_v34, %v2583_v33 }
  0x4e   :  { %v167_v36 = vld [vmem:[#allocation2 + $0x21] sm:$0xff]  ;;  %v2297_v39 = vld [vmem:[#allocation3 + $0x1c] sm:$0xf0]  ;;  %v3641_v43 = vld [vmem:[#allocation3 + $0x58] sm:$0xff]  ;;  %v186_v49 = vpack.c.bf16 %v181_v37, %v181_v37  ;;  %v2332_v51 = vor.u32 %v3135_v32, %v2329_v35 }
  0x4f   :  { %836 = vmatpush.bf16.msrb.mxu3 %v2536_v10  ;;  %858 = vmatpush.bf16.msrb.mxu0 %v2600_v20  ;;  %v3126_v38 = vld [vmem:[#allocation3 + $0xc] sm:$0xf]  ;;  %v2513_v41 = vld [vmem:[#allocation7 + $0x178] sm:$0xf0]  ;;  %v172_v42 = vpack.c.bf16 %v167_v36, %v167_v36  ;;  %v3151_v45 = vld [vmem:[#allocation7 + $0x84] sm:$0xf]  ;;  %v332_v58 = vunpack.c.l.b16 %v3641_v43  ;;  %v331_v20 = vunpack.c.h.b16 %v3624_v9 }
  0x50   :  { %880 = vmatpush.bf16.msrb.mxu1 %v2348_v11  ;;  %v3213_v46 = vld [vmem:[#allocation7 + $0x274] sm:$0xf]  ;;  %v2393_v52 = vld [vmem:[#allocation7 + $0x88] sm:$0xf0]  ;;  %v2641_v53 = vld [vmem:[#allocation7 + $0x278] sm:$0xf0]  ;;  %v2516_v54 = vor.u32 %v3181_v29, %v2513_v41  ;;  %v3644_v1 = vor.u32 %v3126_v38, %v2297_v39 }
  0x51   :  { %902 = vmatpush.bf16.msrb.mxu2 %v2412_v27  ;;  %177 = vst [vmem:[#allocation3 + $0x48] sm:$0xf] %v172_v42  ;;  %v3197_v55 = vld [vmem:[#allocation7 + $0x1f4] sm:$0xf]  ;;  %v2577_v56 = vld [vmem:[#allocation7 + $0x1f8] sm:$0xf0]  ;;  %v2644_v57 = vor.u32 %v3213_v46, %v2641_v53  ;;  %v2396_v2 = vor.u32 %v3151_v45, %v2393_v52  ;;  %v3646_v15 = vpack.c.b16 %v332_v58, %v332_v58 }
  0x52   :  { %v3179_v61 = vld [vmem:[#allocation7 + $0x164] sm:$0xf]  ;;  %v2505_v63 = vld [vmem:[#allocation7 + $0x168] sm:$0xf0]  ;;  %191 = vst [vmem:[#allocation3 + $0x38] sm:$0xf] %v186_v49  ;;  %v2580_v7 = vor.u32 %v3197_v55, %v2577_v56  ;;  %v3653_v9 = vpack.c.b16 %v331_v20, %v331_v20 }
  0x53   :  { %837 = vmatpush.bf16.msrb.mxu3 %v2528_v28  ;;  %859 = vmatpush.bf16.msrb.mxu0 %v2592_v40  ;;  %v182_v0 = vld [vmem:[#allocation2 + $0x22] sm:$0xff]  ;;  %v3177_v10 = vld [vmem:[#allocation7 + $0x154] sm:$0xf]  ;;  %v2508_v11 = vor.u32 %v3179_v61, %v2505_v63  ;;  %v3129_v16 = vld [vmem:[#allocation3 + $0x20] sm:$0xf0] }
  0x54   :  { %881 = vmatpush.bf16.msrb.mxu1 %v2340_v22  ;;  %v187_v3 = vpack.c.bf16 %v182_v0, %v182_v0  ;;  %v3211_v4 = vld [vmem:[#allocation7 + $0x264] sm:$0xf]  ;;  %v2633_v5 = vld [vmem:[#allocation7 + $0x268] sm:$0xf0]  ;;  %v2497_v18 = vld [vmem:[#allocation7 + $0x158] sm:$0xf0] }
  0x55   :  { %903 = vmatpush.bf16.msrb.mxu2 %v2404_v44  ;;  %v2303_v6 = vld [vmem:[#allocation3 + $0x10] sm:$0xf]  ;;  %v3195_v12 = vld [vmem:[#allocation7 + $0x1e4] sm:$0xf]  ;;  %v2636_v62 = vor.u32 %v3211_v4, %v2633_v5  ;;  %v3209_v23 = vld [vmem:[#allocation7 + $0x254] sm:$0xf]  ;;  %v2500_v28 = vor.u32 %v3177_v10, %v2497_v18 }
  0x56   :  { %v2569_v13 = vld [vmem:[#allocation7 + $0x1e8] sm:$0xf0]  ;;  %192 = vst [vmem:[#allocation3 + $0x4c] sm:$0xf] %v187_v3  ;;  %v2625_v24 = vld [vmem:[#allocation7 + $0x258] sm:$0xf0]  ;;  %v3650_v27 = vor.u32 %v3129_v16, %v2303_v6 }
  0x57   :  { %838 = vmatpush.bf16.msrb.mxu3 %v2520_v50  ;;  %860 = vmatpush.bf16.msrb.mxu0 %v2584_v60  ;;  %v183_v19 = vld [vmem:[#allocation2 + $0x2a] sm:$0xff]  ;;  %v2572_v26 = vor.u32 %v3195_v12, %v2569_v13  ;;  %v2561_v29 = vld [vmem:[#allocation7 + $0x1d8] sm:$0xf0]  ;;  %v3175_v30 = vld [vmem:[#allocation7 + $0x144] sm:$0xf]  ;;  %v2628_v32 = vor.u32 %v3209_v23, %v2625_v24  ;;  %v333_v24 = vunpack.c.h.b16 %v3641_v43 }
  0x58   :  { %882 = vmatpush.bf16.msrb.mxu1 %v2332_v51  ;;  %v188_v25 = vpack.c.bf16 %v183_v19, %v183_v19  ;;  %v3193_v22 = vld [vmem:[#allocation7 + $0x1d4] sm:$0xf]  ;;  %v2489_v31 = vld [vmem:[#allocation7 + $0x148] sm:$0xf0]  ;;  %v2481_v36 = vld [vmem:[#allocation7 + $0x138] sm:$0xf0] }
  0x59   :  { %904 = vmatpush.bf16.msrb.mxu2 %v2396_v2  ;;  %v2564_v33 = vor.u32 %v3193_v22, %v2561_v29  ;;  %v2492_v34 = vor.u32 %v3175_v30, %v2489_v31  ;;  %v3173_v35 = vld [vmem:[#allocation7 + $0x134] sm:$0xf]  ;;  %v3191_v37 = vld [vmem:[#allocation7 + $0x1c4] sm:$0xf]  ;;  %v2553_v38 = vld [vmem:[#allocation7 + $0x1c8] sm:$0xf0] }
  0x5a   :  { %839 = vmatmul.bf16.vlgmr.msrb.gmra.mxu3 %v3644_v1  ;;  %193 = vst [vmem:[#allocation3 + $0x60] sm:$0xf] %v188_v25  ;;  %861 = vmatmul.bf16.vlgmr.msrb.gmra.mxu0 %v3650_v27  ;;  %v3207_v39 = vld [vmem:[#allocation7 + $0x244] sm:$0xf]  ;;  %v2617_v40 = vld [vmem:[#allocation7 + $0x248] sm:$0xf0]  ;;  %v2556_v44 = vor.u32 %v3191_v37, %v2553_v38  ;;  %v2484_v46 = vor.u32 %v3173_v35, %v2481_v36 }
  0x5b   :  { %919 = vmatpush.bf16.msra.mxu3 %v2516_v54  ;;  %941 = vmatpush.bf16.msra.mxu0 %v2580_v7  ;;  %v3131_v41 = vld [vmem:[#allocation3 + $0x34] sm:$0xf]  ;;  %v2317_v42 = vld [vmem:[#allocation3 + $0x44] sm:$0xf0]  ;;  %v2620_v45 = vor.u32 %v3207_v39, %v2617_v40  ;;  %v3189_v49 = vld [vmem:[#allocation7 + $0x1b4] sm:$0xf] }
  0x5c   :  { %963 = vmatpush.bf16.msra.mxu1 %v2644_v57  ;;  %826 = vmatmul.bf16.gmra.mxu2 %v3646_v15  ;;  %v2545_v50 = vld [vmem:[#allocation7 + $0x1b8] sm:$0xf0]  ;;  %v3205_v51 = vld [vmem:[#allocation7 + $0x234] sm:$0xf]  ;;  %v3171_v52 = vld [vmem:[#allocation7 + $0x124] sm:$0xf]  ;;  %v2320_v55 = vor.u32 %v3131_v41, %v2317_v42 }
  0x5d   :  { %804 = vmatmul.bf16.gmra.mxu1 %v3653_v9  ;;  %v2473_v53 = vld [vmem:[#allocation7 + $0x128] sm:$0xf0]  ;;  %v2609_v54 = vld [vmem:[#allocation7 + $0x238] sm:$0xf0]  ;;  %v2548_v57 = vor.u32 %v3189_v49, %v2545_v50  ;;  %v2323_v58 = vld [vmem:[#allocation3 + $0x38] sm:$0xf] }
  0x5e   :  { %v2612_v56 = vor.u32 %v3205_v51, %v2609_v54  ;;  %v2476_v60 = vor.u32 %v3171_v52, %v2473_v53  ;;  %v3187_v61 = vld [vmem:[#allocation7 + $0x1a4] sm:$0xf]  ;;  %v2537_v63 = vld [vmem:[#allocation7 + $0x1a8] sm:$0xf0]  ;;  %v3134_v0 = vld [vmem:[#allocation3 + $0x48] sm:$0xf0] }
  0x5f   :  { %920 = vmatpush.bf16.msra.mxu3 %v2508_v11  ;;  %942 = vmatpush.bf16.msra.mxu0 %v2572_v26  ;;  %v3169_v2 = vld [vmem:[#allocation7 + $0x114] sm:$0xf]  ;;  %v2465_v3 = vld [vmem:[#allocation7 + $0x118] sm:$0xf0]  ;;  %v3203_v4 = vld [vmem:[#allocation7 + $0x224] sm:$0xf]  ;;  %v2540_v5 = vor.u32 %v3187_v61, %v2537_v63  ;;  %v2324_v7 = vor.u32 %v3134_v0, %v2323_v58 }
  0x60   :  { %964 = vmatpush.bf16.msra.mxu1 %v2636_v62  ;;  %v2601_v6 = vld [vmem:[#allocation7 + $0x228] sm:$0xf0]  ;;  %v2468_v10 = vor.u32 %v3169_v2, %v2465_v3  ;;  %v3185_v11 = vld [vmem:[#allocation7 + $0x194] sm:$0xf]  ;;  %v2529_v12 = vld [vmem:[#allocation7 + $0x198] sm:$0xf0] }
  0x61   :  { %v2604_v13 = vor.u32 %v3203_v4, %v2601_v6  ;;  %v3167_v62 = vld [vmem:[#allocation7 + $0x104] sm:$0xf]  ;;  %v2457_v16 = vld [vmem:[#allocation7 + $0x108] sm:$0xf0]  ;;  %v2532_v18 = vor.u32 %v3185_v11, %v2529_v12  ;;  %v3201_v25 = vld [vmem:[#allocation7 + $0x214] sm:$0xf] }
  0x62   :  { %v2460_v19 = vor.u32 %v3167_v62, %v2457_v16  ;;  %v3183_v20 = vld [vmem:[#allocation7 + $0x184] sm:$0xf]  ;;  %v2521_v23 = vld [vmem:[#allocation7 + $0x188] sm:$0xf0]  ;;  %v2593_v26 = vld [vmem:[#allocation7 + $0x218] sm:$0xf0] }
  0x63   :  { %921 = vmatpush.bf16.msra.mxu3 %v2500_v28  ;;  %943 = vmatpush.bf16.msra.mxu0 %v2564_v33  ;;  %v3199_v28 = vld [vmem:[#allocation7 + $0x204] sm:$0xf]  ;;  %v2524_v22 = vor.u32 %v3183_v20, %v2521_v23  ;;  %v2585_v29 = vld [vmem:[#allocation7 + $0x208] sm:$0xf0]  ;;  %v208_v30 = vld [vmem:[#allocation3 + $0x60] sm:$0xf] }
  0x64   :  { %965 = vmatpush.bf16.msra.mxu1 %v2628_v32  ;;  %v2588_v31 = vor.u32 %v3199_v28, %v2585_v29  ;;  %v348_v32 = vpack.c.b16 %v333_v24, %v333_v24  ;;  %v334_v33 = vunpack.c.l.b16 %v208_v30  ;;  %v2743_v2 = vld [vmem:[#allocation10 + $0x70] sm:$0xf]  ;;  %v3240_v3 = vld [vmem:[#allocation10 + $0x74] sm:$0xf0]  ;;  %v3238_v62 = vld [vmem:[#allocation10 + $0x64] sm:$0xf0] }
  0x65   :  { %v2807_v4 = vld [vmem:[#allocation10 + $0xf0] sm:$0xf]  ;;  %v3256_v6 = vld [vmem:[#allocation10 + $0xf4] sm:$0xf0]  ;;  %v2799_v16 = vld [vmem:[#allocation10 + $0xe0] sm:$0xf] }
  0x66   :  { %v3254_v20 = vld [vmem:[#allocation10 + $0xe4] sm:$0xf0]  ;;  %v2727_v23 = vld [vmem:[#allocation10 + $0x50] sm:$0xf]  ;;  %v3236_v24 = vld [vmem:[#allocation10 + $0x54] sm:$0xf0] }
  0x67   :  { %922 = vmatpush.bf16.msra.mxu3 %v2492_v34  ;;  %944 = vmatpush.bf16.msra.mxu0 %v2556_v44  ;;  %v349_v34 = vpack.c.b16 %v334_v33, %v334_v33  ;;  %v3272_v28 = vld [vmem:[#allocation10 + $0x174] sm:$0xf0]  ;;  %v2863_v29 = vld [vmem:[#allocation10 + $0x160] sm:$0xf]  ;;  %v3270_v30 = vld [vmem:[#allocation10 + $0x164] sm:$0xf0] }
  0x68   :  { %966 = vmatpush.bf16.msra.mxu1 %v2620_v45  ;;  %v2864_v33 = vor.u32 %v3270_v30, %v2863_v29  ;;  %v2711_v29 = vld [vmem:[#allocation10 + $0x30] sm:$0xf]  ;;  %v3232_v30 = vld [vmem:[#allocation10 + $0x34] sm:$0xf0] }
  0x6a   :  { %844 = vmatmul.bf16.gmra.mxu3 %v2320_v55  ;;  %866 = vmatmul.bf16.gmra.mxu0 %v2324_v7 }
  0x6b   :  { %923 = vmatpush.bf16.msra.mxu3 %v2484_v46  ;;  %945 = vmatpush.bf16.msra.mxu0 %v2548_v57 }
  0x6c   :  { %967 = vmatpush.bf16.msra.mxu1 %v2612_v56  ;;  %905 = vmatmul.bf16.vlgmr.msrb.gmra.mxu2 %v3614_v17  ;;  %v2596_v17 = vor.u32 %v3201_v25, %v2593_v26  ;;  %v2800_v25 = vor.u32 %v3254_v20, %v2799_v16  ;;  %v2871_v26 = vld [vmem:[#allocation10 + $0x170] sm:$0xf] }
  0x6d   :  { %883 = vmatmul.bf16.vlgmr.msrb.gmra.mxu1 %v3611_v8  ;;  %v3669_v8 = vld [vmem:[#allocation9] sm:$0x3] }
  0x6f   :  { %924 = vmatpush.bf16.msra.mxu3 %v2476_v60  ;;  %946 = vmatpush.bf16.msra.mxu0 %v2540_v5  ;;  %v2744_v5 = vor.u32 %v3240_v3, %v2743_v2  ;;  %v2783_v2 = vld [vmem:[#allocation10 + $0xc0] sm:$0xf]  ;;  %v3250_v3 = vld [vmem:[#allocation10 + $0xc4] sm:$0xf0] }
  0x70   :  { %968 = vmatpush.bf16.msra.mxu1 %v2604_v13  ;;  %v2735_v13 = vld [vmem:[#allocation10 + $0x60] sm:$0xf] }
  0x71   :  { %1647 = vmatpush.bf16.msra.mxu2 %v2744_v5 }
  0x73   :  { %925 = vmatpush.bf16.msra.mxu3 %v2468_v10  ;;  %947 = vmatpush.bf16.msra.mxu0 %v2532_v18 }
  0x74   :  { %969 = vmatpush.bf16.msra.mxu1 %v2596_v17  ;;  %v2872_v17 = vor.u32 %v3272_v28, %v2871_v26 }
  0x77   :  { %926 = vmatpush.bf16.msra.mxu3 %v2460_v19  ;;  %948 = vmatpush.bf16.msra.mxu0 %v2524_v22  ;;  %v2736_v19 = vor.u32 %v3238_v62, %v2735_v13  ;;  %v2728_v22 = vor.u32 %v3236_v24, %v2727_v23  ;;  %v2839_v13 = vld [vmem:[#allocation10 + $0x130] sm:$0xf]  ;;  %v2784_v62 = vor.u32 %v3250_v3, %v2783_v2  ;;  %v2911_v23 = vld [vmem:[#allocation10 + $0x1c0] sm:$0xf]  ;;  %v3282_v24 = vld [vmem:[#allocation10 + $0x1c4] sm:$0xf0] }
  0x78   :  { %970 = vmatpush.bf16.msra.mxu1 %v2588_v31 }
  0x79   :  { %1648 = vmatpush.bf16.msra.mxu2 %v2736_v19  ;;  %v3264_v19 = vld [vmem:[#allocation10 + $0x134] sm:$0xf0] }
  0x7a   :  { %848 = vmatmul.bf16.gmra.mxu3 %v348_v32  ;;  %870 = vmatmul.bf16.gmra.mxu0 %v349_v34  ;;  %v2840_v20 = vor.u32 %v3264_v19, %v2839_v13  ;;  %v2759_v19 = vld [vmem:[#allocation10 + $0x90] sm:$0xf] }
  0x7b   :  { %1691 = vmatpush.bf16.msrb.mxu0 %v2872_v17  ;;  %v3262_v17 = vld [vmem:[#allocation10 + $0x124] sm:$0xf0] }
  0x7c   :  { %910 = vmatmul.bf16.gmra.mxu2 %v3637_v21 }
  0x7d   :  { %888 = vmatmul.bf16.gmra.mxu1 %v3634_v14  ;;  %v3672_v14 = vperm.slane %v3669_v8, 0  ;;  %1649 = vmatpush.bf16.msra.mxu2 %v2728_v22  ;;  %v2912_v22 = vor.u32 %v3282_v24, %v2911_v23  ;;  %v2887_v23 = vld [vmem:[#allocation10 + $0x190] sm:$0xf] }
  0x7f   :  { %1692 = vmatpush.bf16.msrb.mxu0 %v2864_v33 }
  0x8a   :  { %927 = vmatmul.bf16.vlgmr.msra.gmra.mxu3 %v3606_v48  ;;  %949 = vmatmul.bf16.vlgmr.msra.gmra.mxu0 %v3644_v1 }
  0x8c   :  { %914 = vmatmul.bf16.gmra.mxu2 %v3653_v9 }
  0x8d   :  { %892 = vmatmul.bf16.gmra.mxu1 %v3628_v47 }
  0x9a   :  { %932 = vmatmul.bf16.gmra.mxu3 %v3632_v59  ;;  %954 = vmatmul.bf16.gmra.mxu0 %v2320_v55 }
  0x9d   :  { %971 = vmatmul.bf16.vlgmr.msra.gmra.mxu1 %v3650_v27 }
  0xaa   :  { %936 = vmatmul.bf16.gmra.mxu3 %v3646_v15  ;;  %958 = vmatmul.bf16.gmra.mxu0 %v348_v32 }
  0xad   :  { %976 = vmatmul.bf16.gmra.mxu1 %v2324_v7  ;;  %v2808_v7 = vor.u32 %v3256_v6, %v2807_v4  ;;  %v2919_v6 = vld [vmem:[#allocation10 + $0x1d0] sm:$0xf] }
  0xaf   :  { %1669 = vmatpush.bf16.msrb.mxu3 %v2808_v7  ;;  %v3284_v7 = vld [vmem:[#allocation10 + $0x1d4] sm:$0xf0] }
  0xb0   :  { %v2920_v16 = vor.u32 %v3284_v7, %v2919_v6  ;;  %v3258_v6 = vld [vmem:[#allocation10 + $0x104] sm:$0xf0] }
  0xb3   :  { %1670 = vmatpush.bf16.msrb.mxu3 %v2800_v25  ;;  %v2831_v25 = vld [vmem:[#allocation10 + $0x120] sm:$0xf] }
  0xb7   :  { %v774_v48 = vpop.f32.mrf.mxu0 }
  0xb8   :  { %v775_v21 = vadd.f32 %v774_v48, %v3672_v14 }
  0xba   :  { %v796_v43 = vpop.f32.mrf.mxu1 }
  0xbb   :  { %v797_v1 = vadd.f32 %v796_v43, %v775_v21 }
  0xbd   :  { %980 = vmatmul.bf16.gmra.mxu1 %v349_v34 }
  0xbf   :  { %v818_v47 = vpop.f32.mrf.mxu2  ;;  %v3675_v9 = vpop.f32.mrf.mxu0 }
  0xc0   :  { %v819_v59 = vadd.f32 %v818_v47, %v797_v1  ;;  %v2935_v1 = vld [vmem:[#allocation10 + $0x1f0] sm:$0xf]  ;;  %v3288_v47 = vld [vmem:[#allocation10 + $0x1f4] sm:$0xf0] }
  0xc2   :  { %v3677_v27 = vpop.f32.mrf.mxu1 }
  0xc7   :  { %v3679_v15 = vpop.f32.mrf.mxu2  ;;  %v783_v35 = vpop.f32.mrf.mxu3 }
  0xc8   :  { %v779_v36 = vpop.f32.mrf.mxu0  ;;  %v784_v46 = vadd.f32 %v783_v35, %v3672_v14  ;;  %v2936_v35 = vor.u32 %v3288_v47, %v2935_v1  ;;  %v3230_v1 = vld [vmem:[#allocation10 + $0x24] sm:$0xf0] }
  0xc9   :  { %v3268_v36 = vld [vmem:[#allocation10 + $0x154] sm:$0xf0] }
  0xca   :  { %v801_v37 = vpop.f32.mrf.mxu1  ;;  %1713 = vmatpush.bf16.msrb.mxu1 %v2936_v35  ;;  %v2767_v35 = vld [vmem:[#allocation10 + $0xa0] sm:$0xf] }
  0xcf   :  { %v823_v38 = vpop.f32.mrf.mxu2  ;;  %v785_v39 = vpop.f32.mrf.mxu3 }
  0xd0   :  { %v3681_v40 = vpop.f32.mrf.mxu0  ;;  %v2927_v38 = vld [vmem:[#allocation10 + $0x1e0] sm:$0xf]  ;;  %v3286_v39 = vld [vmem:[#allocation10 + $0x1e4] sm:$0xf0] }
  0xd2   :  { %v3683_v41 = vpop.f32.mrf.mxu1 }
  0xd7   :  { %v3685_v42 = vpop.f32.mrf.mxu2 }
  0xd8   :  { %v862_v45 = vpop.f32.mrf.mxu0 }
  0xda   :  { %v805_v50 = vpop.f32.mrf.mxu1 }
  0xdb   :  { %v806_v51 = vadd.f32 %v805_v50, %v784_v46  ;;  %v3266_v50 = vld [vmem:[#allocation10 + $0x144] sm:$0xf0] }
  0xdd   :  { %v840_v44 = vpop.f32.mrf.mxu3 }
  0xde   :  { %v841_v49 = vadd.f32 %v840_v44, %v819_v59  ;;  %v2855_v59 = vld [vmem:[#allocation10 + $0x150] sm:$0xf]  ;;  %v2847_v44 = vld [vmem:[#allocation10 + $0x140] sm:$0xf] }
  0xdf   :  { %v827_v53 = vpop.f32.mrf.mxu2  ;;  %v2856_v37 = vor.u32 %v3268_v36, %v2855_v59  ;;  %v3246_v36 = vld [vmem:[#allocation10 + $0xa4] sm:$0xf0] }
  0xe0   :  { %v3688_v52 = vadd.f32 %v862_v45, %v841_v49  ;;  %v828_v54 = vadd.f32 %v827_v53, %v806_v51  ;;  %v3692_v56 = vpop.f32.mrf.mxu0  ;;  %v2928_v49 = vor.u32 %v3286_v39, %v2927_v38  ;;  %v2791_v51 = vld [vmem:[#allocation10 + $0xd0] sm:$0xf]  ;;  %v3252_v53 = vld [vmem:[#allocation10 + $0xd4] sm:$0xf0]  ;;  %v3719_v38 = vperm.slane %v3669_v8, 1 }
  0xe1   :  { %1693 = vmatpush.bf16.msrb.mxu0 %v2856_v37  ;;  %v2903_v37 = vld [vmem:[#allocation10 + $0x1b0] sm:$0xf] }
  0xe2   :  { %v807_v57 = vpop.f32.mrf.mxu1  ;;  %1714 = vmatpush.bf16.msrb.mxu1 %v2928_v49 }
  0xe3   :  { %v2848_v57 = vor.u32 %v3266_v50, %v2847_v44  ;;  %v3280_v44 = vld [vmem:[#allocation10 + $0x1b4] sm:$0xf0] }
  0xe4   :  { %v2904_v49 = vor.u32 %v3280_v44, %v2903_v37  ;;  %v3228_v50 = vld [vmem:[#allocation10 + $0x14] sm:$0xf0] }
  0xe5   :  { %v3690_v55 = vpop.f32.mrf.mxu3  ;;  %1694 = vmatpush.bf16.msrb.mxu0 %v2848_v57  ;;  %v2895_v57 = vld [vmem:[#allocation10 + $0x1a0] sm:$0xf] }
  0xe6   :  { %1715 = vmatpush.bf16.msrb.mxu1 %v2920_v16 }
  0xe7   :  { %v829_v58 = vpop.f32.mrf.mxu2 }
  0xe8   :  { %v867_v61 = vpop.f32.mrf.mxu0 }
  0xe9   :  { %v3234_v61 = vld [vmem:[#allocation10 + $0x44] sm:$0xf0]  ;;  %1695 = vmatpush.bf16.msrb.mxu0 %v2840_v20  ;;  %v3244_v20 = vld [vmem:[#allocation10 + $0x94] sm:$0xf0] }
  0xea   :  { %v3694_v63 = vpop.f32.mrf.mxu1  ;;  %1716 = vmatpush.bf16.msrb.mxu1 %v2912_v22  ;;  %v2760_v22 = vor.u32 %v3244_v20, %v2759_v19  ;;  %v2983_v20 = vld [vmem:[#allocation10 + $0x250] sm:$0xf] }
  0xeb   :  { %v885_v7 = vadd.f32 %v3694_v63, %v3719_v38  ;;  %v2687_v63 = vld [vmem:[#allocation10] sm:$0xf] }
  0xed   :  { %v845_v60 = vpop.f32.mrf.mxu3 }
  0xee   :  { %v2792_v60 = vor.u32 %v3252_v53, %v2791_v51  ;;  %v2823_v51 = vld [vmem:[#allocation10 + $0x110] sm:$0xf]  ;;  %v3260_v53 = vld [vmem:[#allocation10 + $0x114] sm:$0xf0]  ;;  %1717 = vmatpush.bf16.msrb.mxu1 %v2904_v49 }
  0xef   :  { %v3696_v0 = vpop.f32.mrf.mxu2 }
  0xf0   :  { %v3700_v11 = vpop.f32.mrf.mxu0  ;;  %1671 = vmatpush.bf16.msrb.mxu3 %v2792_v60  ;;  %v3278_v60 = vld [vmem:[#allocation10 + $0x1a4] sm:$0xf0]  ;;  %v907_v16 = vadd.f32 %v3696_v0, %v885_v7 }
  0xf2   :  { %v3702_v12 = vpop.f32.mrf.mxu1 }
  0xf4   :  { %1672 = vmatpush.bf16.msrb.mxu3 %v2784_v62 }
  0xf5   :  { %v3698_v10 = vpop.f32.mrf.mxu3 }
  0xf7   :  { %v3704_v18 = vpop.f32.mrf.mxu2 }
  0xf8   :  { %v871_v32 = vpop.f32.mrf.mxu0 }
  0xfa   :  { %v889_v48 = vpop.f32.mrf.mxu1 }
  0xfb   :  { %v3248_v48 = vld [vmem:[#allocation10 + $0xb4] sm:$0xf0] }
  0xfd   :  { %v849_v31 = vpop.f32.mrf.mxu3 }
  0xfe   :  { %v850_v34 = vadd.f32 %v849_v31, %v828_v54  ;;  %v2719_v54 = vld [vmem:[#allocation10 + $0x40] sm:$0xf]  ;;  %v2775_v31 = vld [vmem:[#allocation10 + $0xb0] sm:$0xf] }
  0xff   :  { %v911_v43 = vpop.f32.mrf.mxu2  ;;  %v2720_v5 = vor.u32 %v3234_v61, %v2719_v54  ;;  %v2776_v59 = vor.u32 %v3248_v48, %v2775_v31  ;;  %v2824_v54 = vor.u32 %v3260_v53, %v2823_v51  ;;  %v2815_v61 = vld [vmem:[#allocation10 + $0x100] sm:$0xf]  ;;  %v3226_v31 = vld [vmem:[#allocation10 + $0x4] sm:$0xf0] }
 0x100   :  { %v3706_v21 = vadd.f32 %v871_v32, %v850_v34  ;;  %v873_v46 = vpop.f32.mrf.mxu0  ;;  %v2832_v32 = vor.u32 %v3262_v17, %v2831_v25  ;;  %v2712_v34 = vor.u32 %v3232_v30, %v2711_v29  ;;  %v2703_v43 = vld [vmem:[#allocation10 + $0x20] sm:$0xf]  ;;  %v2816_v13 = vor.u32 %v3258_v6, %v2815_v61  ;;  %v3276_v17 = vld [vmem:[#allocation10 + $0x194] sm:$0xf0] }
 0x101   :  { %1650 = vmatpush.bf16.msra.mxu2 %v2720_v5  ;;  %v2704_v39 = vor.u32 %v3230_v1, %v2703_v43  ;;  %1673 = vmatpush.bf16.msrb.mxu3 %v2776_v59  ;;  %v2768_v46 = vor.u32 %v3246_v36, %v2767_v35  ;;  %v2896_v5 = vor.u32 %v3278_v60, %v2895_v57  ;;  %v3242_v1 = vld [vmem:[#allocation10 + $0x84] sm:$0xf0]  ;;  %v2879_v59 = vld [vmem:[#allocation10 + $0x180] sm:$0xf]  ;;  %v3304_v60 = vld [vmem:[#allocation10 + $0x274] sm:$0xf0] }
 0x102   :  { %v3708_v58 = vpop.f32.mrf.mxu1  ;;  %1696 = vmatpush.bf16.msrb.mxu0 %v2832_v32  ;;  %v777_v25 = vadd.f32 %v3675_v9, %v3672_v14  ;;  %v2888_v30 = vor.u32 %v3276_v17, %v2887_v23  ;;  %v2751_v32 = vld [vmem:[#allocation10 + $0x80] sm:$0xf]  ;;  %v2688_v43 = vor.u32 %v3226_v31, %v2687_v63  ;;  %v3274_v35 = vld [vmem:[#allocation10 + $0x184] sm:$0xf0]  ;;  %v887_v9 = vadd.f32 %v3702_v12, %v3719_v38  ;;  %v3300_v23 = vld [vmem:[#allocation10 + $0x254] sm:$0xf0] }
 0x103   :  { %1718 = vmatpush.bf16.msrb.mxu1 %v2896_v5  ;;  %v2880_v37 = vor.u32 %v3274_v35, %v2879_v59  ;;  %v2991_v5 = vld [vmem:[#allocation10 + $0x260] sm:$0xf]  ;;  %v2809_v59 = vld [vmem:[#allocation10 + $0xf8] sm:$0xf0] }
 0x104   :  { %v799_v0 = vadd.f32 %v3677_v27, %v777_v25  ;;  %v3235_v25 = vld [vmem:[#allocation10 + $0x54] sm:$0xf] }
 0x105   :  { %v851_v45 = vpop.f32.mrf.mxu3  ;;  %1651 = vmatpush.bf16.msra.mxu2 %v2712_v34  ;;  %1674 = vmatpush.bf16.msrb.mxu3 %v2768_v46  ;;  %v985_v46 = vmax.f32 %v3688_v52, 0.0  ;;  %v781_v52 = vadd.f32 %v3681_v40, %v3672_v14 }
 0x106   :  { %v2695_v45 = vld [vmem:[#allocation10 + $0x10] sm:$0xf]  ;;  %1697 = vmatpush.bf16.msrb.mxu0 %v2824_v54  ;;  %v821_v44 = vadd.f32 %v3679_v15, %v799_v0  ;;  %v891_v0 = vadd.f32 %v3708_v58, %v3719_v38 }
 0x107   :  { %v3710_v4 = vpop.f32.mrf.mxu2  ;;  %v2696_v8 = vor.u32 %v3228_v50, %v2695_v45  ;;  %1719 = vmatpush.bf16.msrb.mxu1 %v2888_v30  ;;  %v909_v45 = vadd.f32 %v3704_v18, %v887_v9  ;;  %v2999_v18 = vld [vmem:[#allocation10 + $0x270] sm:$0xf]  ;;  %v803_v14 = vadd.f32 %v3683_v41, %v781_v52 }
 0x108   :  { %v3712_v28 = vpop.f32.mrf.mxu0  ;;  %v843_v49 = vadd.f32 %v3690_v55, %v821_v44  ;;  %v3000_v61 = vor.u32 %v3304_v60, %v2999_v18  ;;  %v913_v9 = vadd.f32 %v3710_v4, %v891_v0 }
 0x109   :  { %1652 = vmatpush.bf16.msra.mxu2 %v2704_v39  ;;  %1675 = vmatpush.bf16.msrb.mxu3 %v2760_v22  ;;  %v2729_v22 = vld [vmem:[#allocation10 + $0x58] sm:$0xf0]  ;;  %v825_v17 = vadd.f32 %v3685_v42, %v803_v14 }
 0x10a   :  { %v3714_v33 = vpop.f32.mrf.mxu1  ;;  %1698 = vmatpush.bf16.msrb.mxu0 %v2816_v13  ;;  %v865_v54 = vadd.f32 %v3692_v56, %v843_v49  ;;  %v3302_v56 = vld [vmem:[#allocation10 + $0x264] sm:$0xf0]  ;;  %v2732_v42 = vor.u32 %v3235_v25, %v2729_v22  ;;  %v2801_v49 = vld [vmem:[#allocation10 + $0xe8] sm:$0xf0]  ;;  %v3271_v25 = vld [vmem:[#allocation10 + $0x174] sm:$0xf] }
 0x10b   :  { %1720 = vmatpush.bf16.msrb.mxu1 %v2880_v37  ;;  %v2992_v13 = vor.u32 %v3302_v56, %v2991_v5  ;;  %v847_v35 = vadd.f32 %v3698_v10, %v825_v17  ;;  %v3298_v37 = vld [vmem:[#allocation10 + $0x244] sm:$0xf0]  ;;  %v894_v10 = vadd.f32 %v3714_v33, %v3719_v38  ;;  %v3251_v38 = vld [vmem:[#allocation10 + $0xd4] sm:$0xf] }
 0x10d   :  { %v928_v26 = vpop.f32.mrf.mxu3  ;;  %1653 = vmatpush.bf16.msra.mxu2 %v2696_v8  ;;  %v2745_v8 = vld [vmem:[#allocation10 + $0x78] sm:$0xf0]  ;;  %v869_v44 = vadd.f32 %v3700_v11, %v847_v35 }
 0x10e   :  { %v929_v29 = vadd.f32 %v928_v26, %v907_v16  ;;  %v2752_v26 = vor.u32 %v3242_v1, %v2751_v32  ;;  %v987_v16 = vmax.f32 %v865_v54, 0.0  ;;  %v2984_v32 = vor.u32 %v3300_v23, %v2983_v20  ;;  %v3255_v1 = vld [vmem:[#allocation10 + $0xf4] sm:$0xf] }
 0x10f   :  { %v3716_v47 = vpop.f32.mrf.mxu2 }
 0x110   :  { %v952_v3 = vpop.f32.mrf.mxu0  ;;  %v951_v36 = vadd.f32 %v3712_v28, %v929_v29  ;;  %1676 = vmatpush.bf16.msrb.mxu3 %v2752_v26  ;;  %v2975_v26 = vld [vmem:[#allocation10 + $0x240] sm:$0xf] }
 0x111   :  { %1654 = vmatpush.bf16.msra.mxu2 %v2688_v43 }
 0x112   :  { %v895_v62 = vpop.f32.mrf.mxu1 }
 0x113   :  { %v2737_v62 = vld [vmem:[#allocation10 + $0x68] sm:$0xf0] }
 0x115   :  { %v930_v2 = vpop.f32.mrf.mxu3  ;;  %1735 = vmatpush.bf16.msrb.mxu2 %v3000_v61 }
 0x116   :  { %v931_v50 = vadd.f32 %v930_v2, %v909_v45  ;;  %v3239_v2 = vld [vmem:[#allocation10 + $0x74] sm:$0xf]  ;;  %v2976_v45 = vor.u32 %v3298_v37, %v2975_v26  ;;  %v2959_v26 = vld [vmem:[#allocation10 + $0x220] sm:$0xf] }
 0x117   :  { %v917_v24 = vpop.f32.mrf.mxu2  ;;  %v2748_v7 = vor.u32 %v3239_v2, %v2745_v8  ;;  %v916_v8 = vadd.f32 %v3716_v47, %v894_v10  ;;  %v2967_v47 = vld [vmem:[#allocation10 + $0x230] sm:$0xf]  ;;  %v3355_v10 = vld [vmem:[#allocation2] sm:$0xff] }
 0x118   :  { %v955_v48 = vpop.f32.mrf.mxu0  ;;  %v953_v57 = vadd.f32 %v952_v3, %v931_v50  ;;  %v3237_v3 = vld [vmem:[#allocation10 + $0x64] sm:$0xf] }
 0x119   :  { %1757 = vmatpush.bf16.msra.mxu3 %v2748_v7  ;;  %v2740_v40 = vor.u32 %v3237_v3, %v2737_v62  ;;  %1736 = vmatpush.bf16.msrb.mxu2 %v2992_v13  ;;  %v989_v7 = vmax.f32 %v869_v44, 0.0 }
 0x11a   :  { %v972_v39 = vpop.f32.mrf.mxu1 }
 0x11b   :  { %v973_v27 = vadd.f32 %v972_v39, %v951_v36  ;;  %v2812_v36 = vor.u32 %v3255_v1, %v2809_v59  ;;  %v3233_v39 = vld [vmem:[#allocation10 + $0x44] sm:$0xf]  ;;  %v2785_v1 = vld [vmem:[#allocation10 + $0xc8] sm:$0xf0] }
 0x11c   :  { %v3269_v59 = vld [vmem:[#allocation10 + $0x164] sm:$0xf] }
 0x11d   :  { %v933_v34 = vpop.f32.mrf.mxu3  ;;  %v986_v51 = vmax.f32 %v973_v27, 0.0  ;;  %1758 = vmatpush.bf16.msra.mxu3 %v2740_v40  ;;  %1737 = vmatpush.bf16.msrb.mxu2 %v2984_v32  ;;  %v2721_v27 = vld [vmem:[#allocation10 + $0x48] sm:$0xf0]  ;;  %v3296_v40 = vld [vmem:[#allocation10 + $0x234] sm:$0xf0] }
 0x11e   :  { %1779 = vmatpush.bf16.msra.mxu0 %v2812_v36  ;;  %v2968_v17 = vor.u32 %v3296_v40, %v2967_v47  ;;  %v3245_v40 = vld [vmem:[#allocation10 + $0xa4] sm:$0xf] }
 0x11f   :  { %v3734_v12 = vadd.f32 %v986_v51, %v985_v46  ;;  %v3253_v46 = vld [vmem:[#allocation10 + $0xe4] sm:$0xf] }
 0x120   :  { %v3736_v53 = vpop.f32.mrf.mxu0 }
 0x121   :  { %997 = vst [vmem:[#allocation2 + $0x8] sm:$0xff] %v3734_v12  ;;  %v1036_v15 = vpack.c.bf16 %v3734_v12, %v3734_v12  ;;  %1759 = vmatpush.bf16.msra.mxu3 %v2732_v42  ;;  %1738 = vmatpush.bf16.msrb.mxu2 %v2976_v45 }
 0x122   :  { %v974_v55 = vpop.f32.mrf.mxu1 }
 0x123   :  { %v975_v6 = vadd.f32 %v974_v55, %v953_v57  ;;  %1041 = vst [vmem:[#allocation3 + $0x8] sm:$0xf] %v1036_v15  ;;  %v2724_v57 = vor.u32 %v3233_v39, %v2721_v27  ;;  %v2804_v15 = vor.u32 %v3253_v46, %v2801_v49  ;;  %v3294_v27 = vld [vmem:[#allocation10 + $0x224] sm:$0xf0] }
 0x125   :  { %v934_v28 = vpop.f32.mrf.mxu3  ;;  %v988_v19 = vmax.f32 %v975_v6, 0.0  ;;  %1760 = vmatpush.bf16.msra.mxu3 %v2724_v57  ;;  %1780 = vmatpush.bf16.msra.mxu0 %v2804_v15  ;;  %v2793_v6 = vld [vmem:[#allocation10 + $0xd8] sm:$0xf0] }
 0x126   :  { %v935_v58 = vadd.f32 %v934_v28, %v913_v9  ;;  %1739 = vmatpush.bf16.msrb.mxu2 %v2968_v17 }
 0x127   :  { %v3745_v24 = vadd.f32 %v988_v19, %v987_v16 }
 0x128   :  { %v3748_v30 = vpop.f32.mrf.mxu0  ;;  %v1001_v63 = vld [vmem:[#allocation2 + $0x6] sm:$0xff]  ;;  %v957_v18 = vadd.f32 %v3736_v53, %v935_v58  ;;  %v2796_v53 = vor.u32 %v3251_v38, %v2793_v6 }
 0x129   :  { %v1016_v31 = vld [vmem:[#allocation2 + $0x7] sm:$0xff]  ;;  %998 = vst [vmem:[#allocation2 + $0x10] sm:$0xff] %v3745_v24  ;;  %v1006_v41 = vpack.c.bf16 %v1001_v63, %v1001_v63  ;;  %v1037_v48 = vpack.c.bf16 %v3745_v24, %v3745_v24  ;;  %v3231_v63 = vld [vmem:[#allocation10 + $0x34] sm:$0xf] }
 0x12a   :  { %v1021_v34 = vpack.c.bf16 %v1016_v31, %v1016_v31  ;;  %v977_v43 = vpop.f32.mrf.mxu1  ;;  %v2655_v62 = vld [vmem:[#allocation3 + $0x8] sm:$0xf]  ;;  %1781 = vmatpush.bf16.msra.mxu0 %v2796_v53  ;;  %v2865_v58 = vld [vmem:[#allocation10 + $0x168] sm:$0xf0] }
 0x12b   :  { %1011 = vst [vmem:[#allocation3] sm:$0xf] %v1006_v41  ;;  %v2713_v41 = vld [vmem:[#allocation10 + $0x38] sm:$0xf0]  ;;  %v2868_v45 = vor.u32 %v3269_v59, %v2865_v58  ;;  %v3263_v59 = vld [vmem:[#allocation10 + $0x134] sm:$0xf] }
 0x12c   :  { %1026 = vst [vmem:[#allocation3 + $0x4] sm:$0xf] %v1021_v34  ;;  %v3249_v34 = vld [vmem:[#allocation10 + $0xc4] sm:$0xf]  ;;  %v2716_v42 = vor.u32 %v3231_v63, %v2713_v41  ;;  %v2697_v41 = vld [vmem:[#allocation10 + $0x18] sm:$0xf0] }
 0x12d   :  { %v937_v29 = vpop.f32.mrf.mxu3  ;;  %1042 = vst [vmem:[#allocation3 + $0x1c] sm:$0xf] %v1037_v48  ;;  %v3265_v63 = vld [vmem:[#allocation10 + $0x144] sm:$0xf] }
 0x12e   :  { %v938_v13 = vadd.f32 %v937_v29, %v916_v8  ;;  %v2873_v29 = vld [vmem:[#allocation10 + $0x178] sm:$0xf0]  ;;  %1761 = vmatpush.bf16.msra.mxu3 %v2716_v42  ;;  %v3267_v8 = vld [vmem:[#allocation10 + $0x154] sm:$0xf]  ;;  %v3225_v58 = vld [vmem:[#allocation10 + $0x4] sm:$0xf] }
 0x12f   :  { %v2876_v0 = vor.u32 %v3271_v25, %v2873_v29  ;;  %v2769_v25 = vld [vmem:[#allocation10 + $0xa8] sm:$0xf0]  ;;  %v2761_v42 = vld [vmem:[#allocation10 + $0x98] sm:$0xf0] }
 0x130   :  { %v1002_v50 = vld [vmem:[#allocation2 + $0xe] sm:$0xff]  ;;  %v961_v28 = vpop.f32.mrf.mxu0  ;;  %v1003_v61 = vld [vmem:[#allocation2 + $0x16] sm:$0xff]  ;;  %v960_v31 = vadd.f32 %v3748_v30, %v938_v13  ;;  %v2788_v30 = vor.u32 %v3249_v34, %v2785_v1  ;;  %v2772_v29 = vor.u32 %v3245_v40, %v2769_v25 }
 0x131   :  { %v1017_v51 = vld [vmem:[#allocation2 + $0xf] sm:$0xff]  ;;  %v1007_v60 = vpack.c.bf16 %v1002_v50, %v1002_v50  ;;  %v1018_v2 = vld [vmem:[#allocation2 + $0x17] sm:$0xff]  ;;  %v1008_v3 = vpack.c.bf16 %v1003_v61, %v1003_v61  ;;  %1801 = vmatpush.bf16.msra.mxu1 %v2876_v0  ;;  %v2960_v50 = vor.u32 %v3294_v27, %v2959_v26  ;;  %v991_v28 = vmax.f32 %v3706_v21, 0.0 }
 0x132   :  { %v1046_v54 = vld [vmem:[#allocation2 + $0x9] sm:$0xff]  ;;  %v1022_v52 = vpack.c.bf16 %v1017_v51, %v1017_v51  ;;  %v1047_v55 = vld [vmem:[#allocation2 + $0x11] sm:$0xff]  ;;  %v978_v5 = vpop.f32.mrf.mxu1  ;;  %v1023_v19 = vpack.c.bf16 %v1018_v2, %v1018_v2  ;;  %1782 = vmatpush.bf16.msra.mxu0 %v2788_v30 }
 0x133   :  { %v1051_v11 = vpack.c.bf16 %v1046_v54, %v1046_v54  ;;  %v1052_v33 = vpack.c.bf16 %v1047_v55, %v1047_v55  ;;  %v979_v56 = vadd.f32 %v978_v5, %v957_v18  ;;  %1012 = vst [vmem:[#allocation3 + $0x14] sm:$0xf] %v1007_v60  ;;  %v1061_v14 = vld [vmem:[#allocation2 + $0xa] sm:$0xff]  ;;  %v2647_v32 = vld [vmem:[#allocation3] sm:$0xf]  ;;  %1740 = vmatpush.bf16.msrb.mxu2 %v2960_v50 }
 0x134   :  { %1027 = vst [vmem:[#allocation3 + $0x18] sm:$0xf] %v1022_v52  ;;  %v3218_v16 = vld [vmem:[#allocation3 + $0x18] sm:$0xf0]  ;;  %v3215_v48 = vld [vmem:[#allocation3 + $0x4] sm:$0xf]  ;;  %v1066_v35 = vpack.c.bf16 %v1061_v14, %v1061_v14 }
 0x135   :  { %v939_v4 = vpop.f32.mrf.mxu3  ;;  %v990_v20 = vmax.f32 %v979_v56, 0.0  ;;  %v3762_v23 = vor.u32 %v3218_v16, %v2655_v62  ;;  %1056 = vst [vmem:[#allocation3 + $0xc] sm:$0xf] %v1051_v11  ;;  %v3247_v51 = vld [vmem:[#allocation10 + $0xb4] sm:$0xf]  ;;  %1802 = vmatpush.bf16.msra.mxu1 %v2868_v45 }
 0x136   :  { %1057 = vst [vmem:[#allocation3 + $0x20] sm:$0xf] %v1052_v33  ;;  %v1909_v4 = vpack.c.bf16 %v3355_v10, %v3355_v10  ;;  %v2777_v54 = vld [vmem:[#allocation10 + $0xb8] sm:$0xf0]  ;;  %v2675_v52 = vld [vmem:[#allocation3 + $0x30] sm:$0xf] }
 0x137   :  { %v3764_v22 = vadd.f32 %v990_v20, %v989_v7  ;;  %1699 = vmatmul.bf16.vlgmr.msrb.gmra.mxu0 %v3762_v23  ;;  %1013 = vst [vmem:[#allocation3 + $0x28] sm:$0xf] %v1008_v3  ;;  %v2780_v18 = vor.u32 %v3247_v51, %v2777_v54  ;;  %v3229_v55 = vld [vmem:[#allocation10 + $0x24] sm:$0xf]  ;;  %v2705_v11 = vld [vmem:[#allocation10 + $0x28] sm:$0xf0] }
 0x138   :  { %1028 = vst [vmem:[#allocation3 + $0x2c] sm:$0xf] %v1023_v19  ;;  %v2708_v21 = vor.u32 %v3229_v55, %v2705_v11  ;;  %v2857_v5 = vld [vmem:[#allocation10 + $0x158] sm:$0xf0]  ;;  %v2951_v13 = vld [vmem:[#allocation10 + $0x210] sm:$0xf] }
 0x139   :  { %999 = vst [vmem:[#allocation2 + $0x20] sm:$0xff] %v3764_v22  ;;  %v1039_v43 = vpack.c.bf16 %v3764_v22, %v3764_v22  ;;  %1783 = vmatpush.bf16.msra.mxu0 %v2780_v18  ;;  %v2860_v7 = vor.u32 %v3267_v8, %v2857_v5  ;;  %v3292_v62 = vld [vmem:[#allocation10 + $0x214] sm:$0xf0]  ;;  %v3227_v0 = vld [vmem:[#allocation10 + $0x14] sm:$0xf] }
 0x13a   :  { %v981_v9 = vpop.f32.mrf.mxu1  ;;  %v3217_v36 = vld [vmem:[#allocation3 + $0x10] sm:$0xf0]  ;;  %1071 = vst [vmem:[#allocation3 + $0x10] sm:$0xf] %v1066_v35  ;;  %v1062_v16 = vld [vmem:[#allocation2 + $0x12] sm:$0xff]  ;;  %1762 = vmatpush.bf16.msra.mxu3 %v2708_v21  ;;  %v2952_v14 = vor.u32 %v3292_v62, %v2951_v13 }
 0x13b   :  { %v982_v37 = vadd.f32 %v981_v9, %v960_v31  ;;  %v3771_v39 = vor.u32 %v3217_v36, %v2647_v32  ;;  %v2649_v44 = vld [vmem:[#allocation3 + $0x14] sm:$0xf0]  ;;  %1044 = vst [vmem:[#allocation3 + $0x44] sm:$0xf] %v1039_v43  ;;  %1803 = vmatpush.bf16.msra.mxu1 %v2860_v7  ;;  %v2849_v31 = vld [vmem:[#allocation10 + $0x148] sm:$0xf0]  ;;  %v1067_v34 = vpack.c.bf16 %v1062_v16, %v1062_v16 }
 0x13c   :  { %v3773_v46 = vor.u32 %v3215_v48, %v2649_v44  ;;  %v3216_v49 = vld [vmem:[#allocation3 + $0xc] sm:$0xf]  ;;  %1741 = vmatpush.bf16.msrb.mxu2 %v2952_v14  ;;  %v2852_v32 = vor.u32 %v3265_v63, %v2849_v31  ;;  %v2700_v48 = vor.u32 %v3227_v0, %v2697_v41  ;;  %v3243_v43 = vld [vmem:[#allocation10 + $0x94] sm:$0xf]  ;;  %v2841_v35 = vld [vmem:[#allocation10 + $0x138] sm:$0xf0] }
 0x13d   :  { %v992_v57 = vmax.f32 %v982_v37, 0.0  ;;  %1655 = vmatmul.bf16.vlgmr.msra.gmra.mxu2 %v3771_v39  ;;  %v2657_v15 = vld [vmem:[#allocation3 + $0x1c] sm:$0xf0]  ;;  %1784 = vmatpush.bf16.msra.mxu0 %v2772_v29  ;;  %v2764_v1 = vor.u32 %v3243_v43, %v2761_v42  ;;  %v2844_v9 = vor.u32 %v3263_v59, %v2841_v35  ;;  %v2943_v36 = vld [vmem:[#allocation10 + $0x200] sm:$0xf] }
 0x13e   :  { %1677 = vmatmul.bf16.vlgmr.msrb.gmra.mxu3 %v3773_v46  ;;  %v3778_v60 = vor.u32 %v3216_v49, %v2657_v15  ;;  %v3290_v30 = vld [vmem:[#allocation10 + $0x204] sm:$0xf0]  ;;  %v2667_v26 = vld [vmem:[#allocation3 + $0x28] sm:$0xf]  ;;  %1072 = vst [vmem:[#allocation3 + $0x24] sm:$0xf] %v1067_v34 }
 0x13f   :  { %v3780_v61 = vadd.f32 %v992_v57, %v991_v28  ;;  %v3782_v2 = vld [vmem:[#allocation3 + $0x2c] sm:$0xf]  ;;  %1804 = vmatpush.bf16.msra.mxu1 %v2852_v32  ;;  %1763 = vmatpush.bf16.msra.mxu3 %v2700_v48  ;;  %v2944_v27 = vor.u32 %v3290_v30, %v2943_v36  ;;  %v2689_v51 = vld [vmem:[#allocation10 + $0x8] sm:$0xf0]  ;;  %v3259_v62 = vld [vmem:[#allocation10 + $0x114] sm:$0xf] }
 0x140   :  { %1721 = vmatmul.bf16.vlgmr.msrb.gmra.mxu1 %v3778_v60  ;;  %v1004_v33 = vld [vmem:[#allocation2 + $0x1e] sm:$0xff]  ;;  %1914 = vst [vmem:[#allocation3 + $0x2c] sm:$0xf] %v1909_v4  ;;  %v2692_v18 = vor.u32 %v3225_v58, %v2689_v51  ;;  %v2833_v5 = vld [vmem:[#allocation10 + $0x128] sm:$0xf0] }
 0x141   :  { %v1019_v38 = vld [vmem:[#allocation2 + $0x1f] sm:$0xff]  ;;  %1000 = vst [vmem:[#allocation2 + $0x28] sm:$0xff] %v3780_v61  ;;  %v1009_v56 = vpack.c.bf16 %v1004_v33, %v1004_v33  ;;  %v1040_v47 = vpack.c.bf16 %v3780_v61, %v3780_v61  ;;  %1785 = vmatpush.bf16.msra.mxu0 %v2764_v1  ;;  %1742 = vmatpush.bf16.msrb.mxu2 %v2944_v27  ;;  %v2817_v29 = vld [vmem:[#allocation10 + $0x108] sm:$0xf0]  ;;  %v3283_v36 = vld [vmem:[#allocation10 + $0x1d4] sm:$0xf] }
 0x142   :  { %v1048_v6 = vld [vmem:[#allocation2 + $0x19] sm:$0xff]  ;;  %v1024_v3 = vpack.c.bf16 %v1019_v38, %v1019_v38  ;;  %v983_v19 = vpop.f32.mrf.mxu1  ;;  %v3241_v54 = vld [vmem:[#allocation10 + $0x84] sm:$0xf]  ;;  %v2929_v31 = vld [vmem:[#allocation10 + $0x1e8] sm:$0xf0] }
 0x143   :  { %v1053_v53 = vpack.c.bf16 %v1048_v6, %v1048_v6  ;;  %v3223_v20 = vld [vmem:[#allocation3 + $0x40] sm:$0xf0]  ;;  %1014 = vst [vmem:[#allocation3 + $0x3c] sm:$0xf] %v1009_v56  ;;  %1805 = vmatpush.bf16.msra.mxu1 %v2844_v9  ;;  %v3261_v55 = vld [vmem:[#allocation10 + $0x124] sm:$0xf]  ;;  %1764 = vmatpush.bf16.msra.mxu3 %v2692_v18 }
 0x144   :  { %v3788_v17 = vor.u32 %v3223_v20, %v2675_v52  ;;  %1029 = vst [vmem:[#allocation3 + $0x40] sm:$0xf] %v1024_v3  ;;  %v1063_v28 = vld [vmem:[#allocation2 + $0x1a] sm:$0xff]  ;;  %v2753_v52 = vld [vmem:[#allocation10 + $0x88] sm:$0xf0]  ;;  %v2836_v38 = vor.u32 %v3261_v55, %v2833_v5 }
 0x145   :  { %1058 = vst [vmem:[#allocation3 + $0x34] sm:$0xf] %v1053_v53  ;;  %v2756_v8 = vor.u32 %v3241_v54, %v2753_v52  ;;  %v3287_v56 = vld [vmem:[#allocation10 + $0x1f4] sm:$0xf]  ;;  %v2937_v3 = vld [vmem:[#allocation10 + $0x1f8] sm:$0xf0]  ;;  %v1068_v53 = vpack.c.bf16 %v1063_v28, %v1063_v28 }
 0x146   :  { %1045 = vst [vmem:[#allocation3 + $0x58] sm:$0xf] %v1040_v47  ;;  %v2940_v13 = vor.u32 %v3287_v56, %v2937_v3  ;;  %v3303_v20 = vld [vmem:[#allocation10 + $0x274] sm:$0xf]  ;;  %v3001_v47 = vld [vmem:[#allocation10 + $0x278] sm:$0xf0] }
 0x147   :  { %1704 = vmatmul.bf16.gmra.mxu0 %v3788_v17  ;;  %1806 = vmatpush.bf16.msra.mxu1 %v2836_v38  ;;  %v3257_v14 = vld [vmem:[#allocation10 + $0x104] sm:$0xf]  ;;  %v3004_v25 = vor.u32 %v3303_v20, %v3001_v47  ;;  %1073 = vst [vmem:[#allocation3 + $0x38] sm:$0xf] %v1068_v53  ;;  %v2993_v59 = vld [vmem:[#allocation10 + $0x268] sm:$0xf0] }
 0x148   :  { %v1049_v37 = vld [vmem:[#allocation2 + $0x21] sm:$0xff]  ;;  %v1050_v50 = vld [vmem:[#allocation2 + $0x29] sm:$0xff]  ;;  %1786 = vmatpush.bf16.msra.mxu0 %v2756_v8  ;;  %1823 = vmatpush.bf16.msra.mxu2 %v2940_v13  ;;  %v2820_v41 = vor.u32 %v3257_v14, %v2817_v29  ;;  %v2921_v30 = vld [vmem:[#allocation10 + $0x1d8] sm:$0xf0] }
 0x149   :  { %v1005_v44 = vld [vmem:[#allocation2 + $0x26] sm:$0xff]  ;;  %v1054_v49 = vpack.c.bf16 %v1049_v37, %v1049_v37  ;;  %v1055_v15 = vpack.c.bf16 %v1050_v50, %v1050_v50  ;;  %v3285_v63 = vld [vmem:[#allocation10 + $0x1e4] sm:$0xf]  ;;  %1845 = vmatpush.bf16.msrb.mxu3 %v3004_v25  ;;  %v3299_v58 = vld [vmem:[#allocation10 + $0x254] sm:$0xf]  ;;  %v2924_v37 = vor.u32 %v3283_v36, %v2921_v30 }
 0x14a   :  { %v1020_v45 = vld [vmem:[#allocation2 + $0x27] sm:$0xff]  ;;  %v1010_v10 = vpack.c.bf16 %v1005_v44, %v1005_v44  ;;  %v3222_v57 = vld [vmem:[#allocation3 + $0x38] sm:$0xf0]  ;;  %v2932_v34 = vor.u32 %v3285_v63, %v2929_v31  ;;  %v3301_v1 = vld [vmem:[#allocation10 + $0x264] sm:$0xf] }
 0x14b   :  { %v1025_v4 = vpack.c.bf16 %v1020_v45, %v1020_v45  ;;  %v3791_v11 = vor.u32 %v3222_v57, %v2667_v26  ;;  %v2669_v21 = vld [vmem:[#allocation3 + $0x3c] sm:$0xf0]  ;;  %1059 = vst [vmem:[#allocation3 + $0x48] sm:$0xf] %v1054_v49  ;;  %v1064_v6 = vld [vmem:[#allocation2 + $0x22] sm:$0xff]  ;;  %v1065_v7 = vld [vmem:[#allocation2 + $0x2a] sm:$0xff]  ;;  %v2996_v9 = vor.u32 %v3301_v1, %v2993_v59 }
 0x14c   :  { %v3794_v33 = vor.u32 %v3782_v2, %v2669_v21  ;;  %1015 = vst [vmem:[#allocation3 + $0x50] sm:$0xf] %v1010_v10  ;;  %v2825_v2 = vld [vmem:[#allocation10 + $0x118] sm:$0xf0]  ;;  %v1069_v16 = vpack.c.bf16 %v1064_v6, %v1064_v6  ;;  %v1070_v40 = vpack.c.bf16 %v1065_v7, %v1065_v7  ;;  %v3221_v32 = vld [vmem:[#allocation3 + $0x34] sm:$0xf]  ;;  %1824 = vmatpush.bf16.msra.mxu2 %v2932_v34 }
 0x14d   :  { %1660 = vmatmul.bf16.gmra.mxu2 %v3791_v11  ;;  %1030 = vst [vmem:[#allocation3 + $0x54] sm:$0xf] %v1025_v4  ;;  %v2828_v19 = vor.u32 %v3259_v62, %v2825_v2  ;;  %v2985_v44 = vld [vmem:[#allocation10 + $0x258] sm:$0xf0]  ;;  %1846 = vmatpush.bf16.msrb.mxu3 %v2996_v9  ;;  %v3281_v50 = vld [vmem:[#allocation10 + $0x1c4] sm:$0xf] }
 0x14e   :  { %1682 = vmatmul.bf16.gmra.mxu3 %v3794_v33  ;;  %1060 = vst [vmem:[#allocation3 + $0x5c] sm:$0xf] %v1055_v15  ;;  %v2988_v49 = vor.u32 %v3299_v58, %v2985_v44  ;;  %v2913_v51 = vld [vmem:[#allocation10 + $0x1c8] sm:$0xf0]  ;;  %v3297_v54 = vld [vmem:[#allocation10 + $0x244] sm:$0xf] }
 0x14f   :  { %1807 = vmatpush.bf16.msra.mxu1 %v2828_v19  ;;  %1074 = vst [vmem:[#allocation3 + $0x4c] sm:$0xf] %v1069_v16  ;;  %v2916_v57 = vor.u32 %v3281_v50, %v2913_v51  ;;  %v2977_v15 = vld [vmem:[#allocation10 + $0x248] sm:$0xf0]  ;;  %v3279_v55 = vld [vmem:[#allocation10 + $0x1b4] sm:$0xf] }
 0x150   :  { %1075 = vst [vmem:[#allocation3 + $0x60] sm:$0xf] %v1070_v40  ;;  %1825 = vmatpush.bf16.msra.mxu2 %v2924_v37  ;;  %v2980_v18 = vor.u32 %v3297_v54, %v2977_v15  ;;  %v2905_v21 = vld [vmem:[#allocation10 + $0x1b8] sm:$0xf0]  ;;  %v3295_v8 = vld [vmem:[#allocation10 + $0x234] sm:$0xf] }
 0x151   :  { %1847 = vmatpush.bf16.msrb.mxu3 %v2988_v49  ;;  %v2908_v5 = vor.u32 %v3279_v55, %v2905_v21  ;;  %v2969_v38 = vld [vmem:[#allocation10 + $0x238] sm:$0xf0]  ;;  %v3277_v6 = vld [vmem:[#allocation10 + $0x1a4] sm:$0xf]  ;;  %v2897_v7 = vld [vmem:[#allocation10 + $0x1a8] sm:$0xf0] }
 0x152   :  { %v2677_v0 = vld [vmem:[#allocation3 + $0x44] sm:$0xf0]  ;;  %v2972_v56 = vor.u32 %v3295_v8, %v2969_v38  ;;  %v2663_v3 = vld [vmem:[#allocation3 + $0x10] sm:$0xf]  ;;  %v3219_v53 = vld [vmem:[#allocation3 + $0x20] sm:$0xf0]  ;;  %v2900_v13 = vor.u32 %v3277_v6, %v2897_v7 }
 0x153   :  { %v3798_v48 = vor.u32 %v3221_v32, %v2677_v0  ;;  %1808 = vmatpush.bf16.msra.mxu1 %v2820_v41  ;;  %v2664_v62 = vor.u32 %v3219_v53, %v2663_v3  ;;  %v3293_v2 = vld [vmem:[#allocation10 + $0x224] sm:$0xf]  ;;  %v2961_v16 = vld [vmem:[#allocation10 + $0x228] sm:$0xf0]  ;;  %v3275_v19 = vld [vmem:[#allocation10 + $0x194] sm:$0xf] }
 0x154   :  { %v1088_v43 = vld [vmem:[#allocation3 + $0x50] sm:$0xff]  ;;  %1826 = vmatpush.bf16.msra.mxu2 %v2916_v57  ;;  %v2964_v20 = vor.u32 %v3293_v2, %v2961_v16  ;;  %v2889_v47 = vld [vmem:[#allocation10 + $0x198] sm:$0xf0]  ;;  %v3291_v14 = vld [vmem:[#allocation10 + $0x214] sm:$0xf] }
 0x155   :  { %1726 = vmatmul.bf16.gmra.mxu1 %v3798_v48  ;;  %v1089_v42 = vld [vmem:[#allocation3 + $0x58] sm:$0xff]  ;;  %v1212_v26 = vunpack.c.l.b16 %v1088_v43  ;;  %v1213_v45 = vunpack.c.h.b16 %v1088_v43  ;;  %1848 = vmatpush.bf16.msrb.mxu3 %v2980_v18  ;;  %v2953_v40 = vld [vmem:[#allocation10 + $0x218] sm:$0xf0]  ;;  %v2892_v25 = vor.u32 %v3275_v19, %v2889_v47  ;;  %v2881_v63 = vld [vmem:[#allocation10 + $0x188] sm:$0xf0] }
 0x156   :  { %v1214_v35 = vunpack.c.l.b16 %v1089_v42  ;;  %v1215_v28 = vunpack.c.h.b16 %v1089_v42  ;;  %v2956_v29 = vor.u32 %v3291_v14, %v2953_v40  ;;  %v3289_v31 = vld [vmem:[#allocation10 + $0x204] sm:$0xf]  ;;  %v2945_v0 = vld [vmem:[#allocation10 + $0x208] sm:$0xf0]  ;;  %v2683_v34 = vld [vmem:[#allocation3 + $0x38] sm:$0xf] }
 0x157   :  { %v3804_v10 = vpack.c.b16 %v1212_v26, %v1212_v26  ;;  %v1228_v4 = vpack.c.b16 %v1213_v45, %v1213_v45  ;;  %v3224_v41 = vld [vmem:[#allocation3 + $0x48] sm:$0xf0]  ;;  %v1090_v42 = vld [vmem:[#allocation3 + $0x60] sm:$0xf] }
 0x158   :  { %v3801_v27 = vpack.c.b16 %v1214_v35, %v1214_v35  ;;  %v1230_v52 = vpack.c.b16 %v1215_v28, %v1215_v28  ;;  %1827 = vmatpush.bf16.msra.mxu2 %v2908_v5  ;;  %v2684_v43 = vor.u32 %v3224_v41, %v2683_v34 }
 0x159   :  { %1849 = vmatpush.bf16.msrb.mxu3 %v2972_v56 }
 0x15a   :  { %1708 = vmatmul.bf16.gmra.mxu0 %v3801_v27 }
 0x15c   :  { %1828 = vmatpush.bf16.msra.mxu2 %v2900_v13 }
 0x15d   :  { %1664 = vmatmul.bf16.gmra.mxu2 %v3804_v10  ;;  %1850 = vmatpush.bf16.msrb.mxu3 %v2964_v20 }
 0x15e   :  { %1686 = vmatmul.bf16.gmra.mxu3 %v1228_v4 }
 0x160   :  { %1829 = vmatpush.bf16.msra.mxu2 %v2892_v25 }
 0x161   :  { %1851 = vmatpush.bf16.msrb.mxu3 %v2956_v29 }
 0x165   :  { %1730 = vmatmul.bf16.gmra.mxu1 %v1230_v52 }
 0x16a   :  { %1787 = vmatmul.bf16.vlgmr.msra.gmra.mxu0 %v3773_v46  ;;  %v3273_v46 = vld [vmem:[#allocation10 + $0x184] sm:$0xf] }
 0x16b   :  { %v2884_v32 = vor.u32 %v3273_v46, %v2881_v63 }
 0x16d   :  { %1743 = vmatmul.bf16.vlgmr.msrb.gmra.mxu2 %v2664_v62 }
 0x16e   :  { %1765 = vmatmul.bf16.vlgmr.msra.gmra.mxu3 %v3771_v39  ;;  %v2948_v39 = vor.u32 %v3289_v31, %v2945_v0  ;;  %1830 = vmatpush.bf16.msra.mxu2 %v2884_v32  ;;  %v3334_v32 = vld [vmem:[#allocation12 + $0xb8] sm:$0xff] }
 0x170   :  { %1852 = vmatpush.bf16.msrb.mxu3 %v2948_v39 }
 0x172   :  { %2225 = vmatpush.bf16.msrb.mxu2 %v3334_v32  ;;  %v3320_v32 = vld [vmem:[#allocation12 + $0x48] sm:$0xff] }
 0x175   :  { %1809 = vmatmul.bf16.vlgmr.msra.gmra.mxu1 %v3762_v23  ;;  %v1216_v23 = vunpack.c.l.b16 %v1090_v42 }
 0x177   :  { %v1231_v1 = vpack.c.b16 %v1216_v23, %v1216_v23 }
 0x17a   :  { %1792 = vmatmul.bf16.gmra.mxu0 %v3794_v33 }
 0x17d   :  { %1748 = vmatmul.bf16.gmra.mxu2 %v2684_v43 }
 0x17e   :  { %1770 = vmatmul.bf16.gmra.mxu3 %v3791_v11  ;;  %v3820_v11 = vld [vmem:[%s3889_s4] sm:$0x3] }
 0x17f   :  { %v1173_v59 = vperm.slane %v3820_v11, 0 }
 0x185   :  { %1814 = vmatmul.bf16.gmra.mxu1 %v3788_v17 }
 0x18a   :  { %1796 = vmatmul.bf16.gmra.mxu0 %v1228_v4 }
 0x18d   :  { %1752 = vmatmul.bf16.gmra.mxu2 %v1231_v1 }
 0x18e   :  { %1774 = vmatmul.bf16.gmra.mxu3 %v3804_v10 }
 0x195   :  { %1818 = vmatmul.bf16.gmra.mxu1 %v3801_v27 }
 0x19d   :  { %1831 = vmatmul.bf16.vlgmr.msra.gmra.mxu2 %v3778_v60 }
 0x19e   :  { %1853 = vmatmul.bf16.vlgmr.msrb.gmra.mxu3 %v2664_v62 }
 0x1ad   :  { %1836 = vmatmul.bf16.gmra.mxu2 %v3798_v48 }
 0x1ae   :  { %1858 = vmatmul.bf16.gmra.mxu3 %v2684_v43 }
 0x1b4   :  { %v1700_v33 = vpop.f32.mrf.mxu0 }
 0x1bc   :  { %v1702_v17 = vpop.f32.mrf.mxu0 }
 0x1bd   :  { %1840 = vmatmul.bf16.gmra.mxu2 %v1230_v52  ;;  %v1722_v35 = vpop.f32.mrf.mxu1 }
 0x1be   :  { %1862 = vmatmul.bf16.gmra.mxu3 %v1231_v1 }
 0x1c0   :  { %v1656_v9 = vpop.f32.mrf.mxu2 }
 0x1c1   :  { %v1657_v36 = vadd.f32 %v1656_v9, %v1173_v59  ;;  %v1678_v30 = vpop.f32.mrf.mxu3 }
 0x1c3   :  { %v1679_v60 = vadd.f32 %v1678_v30, %v1657_v36 }
 0x1c4   :  { %v1705_v58 = vpop.f32.mrf.mxu0 }
 0x1c5   :  { %v1701_v26 = vadd.f32 %v1700_v33, %v1679_v60  ;;  %v1724_v27 = vpop.f32.mrf.mxu1  ;;  %v3318_v33 = vld [vmem:[#allocation12 + $0x38] sm:$0xff]  ;;  %v3852_v58 = vperm.slane %v3820_v11, 1 }
 0x1c6   :  { %2181 = vmatpush.bf16.msrb.mxu0 %v3318_v33 }
 0x1c7   :  { %v3823_v48 = vadd.f32 %v1722_v35, %v1701_v26  ;;  %v3317_v35 = vld [vmem:[#allocation12 + $0x30] sm:$0xff] }
 0x1c8   :  { %v1658_v37 = vpop.f32.mrf.mxu2  ;;  %v3325_v26 = vld [vmem:[#allocation12 + $0x70] sm:$0xff] }
 0x1c9   :  { %v1659_v44 = vadd.f32 %v1658_v37, %v1173_v59  ;;  %v1680_v45 = vpop.f32.mrf.mxu3  ;;  %v3332_v37 = vld [vmem:[#allocation12 + $0xa8] sm:$0xff] }
 0x1ca   :  { %2182 = vmatpush.bf16.msrb.mxu0 %v3317_v35 }
 0x1cb   :  { %v1681_v49 = vadd.f32 %v1680_v45, %v1659_v44  ;;  %v3316_v44 = vld [vmem:[#allocation12 + $0x28] sm:$0xff] }
 0x1cc   :  { %v1706_v4 = vpop.f32.mrf.mxu0  ;;  %v3324_v45 = vld [vmem:[#allocation12 + $0x68] sm:$0xff] }
 0x1cd   :  { %v1703_v10 = vadd.f32 %v1702_v17, %v1681_v49  ;;  %v3326_v17 = vld [vmem:[#allocation12 + $0x78] sm:$0xff]  ;;  %v3315_v49 = vld [vmem:[#allocation12 + $0x20] sm:$0xff] }
 0x1ce   :  { %2203 = vmatpush.bf16.msrb.mxu1 %v3326_v17  ;;  %2183 = vmatpush.bf16.msrb.mxu0 %v3316_v44  ;;  %v3319_v17 = vld [vmem:[#allocation12 + $0x40] sm:$0xff] }
 0x1cf   :  { %v3825_v50 = vadd.f32 %v1724_v27, %v1703_v10  ;;  %v3331_v27 = vld [vmem:[#allocation12 + $0xa0] sm:$0xff] }
 0x1d0   :  { %v1661_v51 = vpop.f32.mrf.mxu2 }
 0x1d1   :  { %v1683_v54 = vpop.f32.mrf.mxu3 }
 0x1d2   :  { %v1727_v28 = vpop.f32.mrf.mxu1  ;;  %2204 = vmatpush.bf16.msrb.mxu1 %v3325_v26  ;;  %v3323_v54 = vld [vmem:[#allocation12 + $0x60] sm:$0xff]  ;;  %2184 = vmatpush.bf16.msrb.mxu0 %v3315_v49 }
 0x1d3   :  { %v3330_v28 = vld [vmem:[#allocation12 + $0x98] sm:$0xff] }
 0x1d6   :  { %2205 = vmatpush.bf16.msrb.mxu1 %v3324_v45 }
 0x1d7   :  { %v1709_v57 = vpop.f32.mrf.mxu0 }
 0x1d8   :  { %v1662_v15 = vpop.f32.mrf.mxu2 }
 0x1d9   :  { %v1663_v18 = vadd.f32 %v1662_v15, %v1173_v59  ;;  %v1684_v52 = vpop.f32.mrf.mxu3 }
 0x1da   :  { %v1728_v55 = vpop.f32.mrf.mxu1  ;;  %2206 = vmatpush.bf16.msrb.mxu1 %v3323_v54 }
 0x1db   :  { %v1685_v21 = vadd.f32 %v1684_v52, %v1663_v18 }
 0x1dd   :  { %v1707_v8 = vadd.f32 %v1706_v4, %v1685_v21 }
 0x1df   :  { %v3827_v5 = vadd.f32 %v1728_v55, %v1707_v8  ;;  %v1711_v38 = vpop.f32.mrf.mxu0 }
 0x1e0   :  { %v1665_v6 = vpop.f32.mrf.mxu2 }
 0x1e1   :  { %v1666_v7 = vadd.f32 %v1665_v6, %v1173_v59  ;;  %v1687_v56 = vpop.f32.mrf.mxu3  ;;  %v3333_v59 = vld [vmem:[#allocation12 + $0xb0] sm:$0xff] }
 0x1e2   :  { %v1731_v3 = vpop.f32.mrf.mxu1  ;;  %2226 = vmatpush.bf16.msrb.mxu2 %v3333_v59 }
 0x1e3   :  { %v1688_v53 = vadd.f32 %v1687_v56, %v1666_v7  ;;  %v3314_v7 = vld [vmem:[#allocation12 + $0x18] sm:$0xff] }
 0x1e4   :  { %v3322_v56 = vld [vmem:[#allocation12 + $0x58] sm:$0xff]  ;;  %2185 = vmatpush.bf16.msrb.mxu0 %v3314_v7 }
 0x1e5   :  { %v1710_v13 = vadd.f32 %v1709_v57, %v1688_v53  ;;  %2207 = vmatpush.bf16.msrb.mxu1 %v3322_v56 }
 0x1e6   :  { %2227 = vmatpush.bf16.msrb.mxu2 %v3332_v37 }
 0x1e7   :  { %v3829_v62 = vadd.f32 %v1731_v3, %v1710_v13  ;;  %v1788_v2 = vpop.f32.mrf.mxu0  ;;  %v3329_v3 = vld [vmem:[#allocation12 + $0x90] sm:$0xff] }
 0x1e8   :  { %v1667_v16 = vpop.f32.mrf.mxu2 }
 0x1e9   :  { %v1689_v19 = vpop.f32.mrf.mxu3  ;;  %v3321_v16 = vld [vmem:[#allocation12 + $0x50] sm:$0xff] }
 0x1ea   :  { %v1733_v20 = vpop.f32.mrf.mxu1  ;;  %2228 = vmatpush.bf16.msrb.mxu2 %v3331_v27  ;;  %2208 = vmatpush.bf16.msrb.mxu1 %v3321_v16 }
 0x1ee   :  { %2229 = vmatpush.bf16.msrb.mxu2 %v3330_v28  ;;  %2209 = vmatpush.bf16.msrb.mxu1 %v3320_v32 }
 0x1ef   :  { %v1790_v47 = vpop.f32.mrf.mxu0 }
 0x1f0   :  { %v1744_v14 = vpop.f32.mrf.mxu2 }
 0x1f1   :  { %v1766_v40 = vpop.f32.mrf.mxu3  ;;  %v1745_v55 = vadd.f32 %v1744_v14, %v3823_v48 }
 0x1f2   :  { %v1810_v25 = vpop.f32.mrf.mxu1  ;;  %v1767_v10 = vadd.f32 %v1766_v40, %v3852_v58  ;;  %2230 = vmatpush.bf16.msrb.mxu2 %v3329_v3  ;;  %2210 = vmatpush.bf16.msrb.mxu1 %v3319_v17 }
 0x1f3   :  { %v1867_v53 = vmax.f32 %v1745_v55, 0.0 }
 0x1f4   :  { %v1789_v11 = vadd.f32 %v1788_v2, %v1767_v10  ;;  %v3313_v2 = vld [vmem:[#allocation12 + $0x10] sm:$0xff] }
 0x1f5   :  { %2186 = vmatpush.bf16.msrb.mxu0 %v3313_v2 }
 0x1f6   :  { %v1811_v15 = vadd.f32 %v1810_v25, %v1789_v11 }
 0x1f7   :  { %v1793_v29 = vpop.f32.mrf.mxu0 }
 0x1f8   :  { %v3831_v46 = vpop.f32.mrf.mxu2 }
 0x1f9   :  { %v1768_v63 = vpop.f32.mrf.mxu3  ;;  %v1747_v48 = vadd.f32 %v3831_v46, %v3825_v50  ;;  %v3327_v50 = vld [vmem:[#allocation12 + $0x80] sm:$0xff] }
 0x1fa   :  { %v3833_v31 = vpop.f32.mrf.mxu1  ;;  %v1769_v18 = vadd.f32 %v1768_v63, %v3852_v58  ;;  %v3312_v63 = vld [vmem:[#allocation12 + $0x8] sm:$0xff] }
 0x1fb   :  { %2187 = vmatpush.bf16.msrb.mxu0 %v3312_v63 }
 0x1fc   :  { %v1791_v38 = vadd.f32 %v1790_v47, %v1769_v18 }
 0x1fe   :  { %v1813_v19 = vadd.f32 %v3833_v31, %v1791_v38  ;;  %v3311_v31 = vld [vmem:[#allocation12] sm:$0xff] }
 0x1ff   :  { %v3835_v0 = vpop.f32.mrf.mxu0  ;;  %2188 = vmatpush.bf16.msrb.mxu0 %v3311_v31 }
 0x200   :  { %v1749_v39 = vpop.f32.mrf.mxu2 }
 0x201   :  { %v1771_v41 = vpop.f32.mrf.mxu3  ;;  %v3328_v39 = vld [vmem:[#allocation12 + $0x88] sm:$0xff] }
 0x202   :  { %v1815_v34 = vpop.f32.mrf.mxu1  ;;  %2231 = vmatpush.bf16.msrb.mxu2 %v3328_v39 }
 0x203   :  { %v1869_v34 = vmax.f32 %v1747_v48, 0.0 }
 0x206   :  { %2232 = vmatpush.bf16.msrb.mxu2 %v3327_v50 }
 0x207   :  { %v3837_v43 = vpop.f32.mrf.mxu0 }
 0x208   :  { %v3839_v42 = vpop.f32.mrf.mxu2 }
 0x209   :  { %v3841_v23 = vpop.f32.mrf.mxu3 }
 0x20a   :  { %v3843_v1 = vpop.f32.mrf.mxu1 }
 0x20f   :  { %v1799_v9 = vpop.f32.mrf.mxu0 }
 0x210   :  { %v3845_v36 = vpop.f32.mrf.mxu2 }
 0x211   :  { %v3847_v30 = vpop.f32.mrf.mxu3  ;;  %v1754_v38 = vadd.f32 %v3845_v36, %v3829_v62 }
 0x212   :  { %v3849_v60 = vpop.f32.mrf.mxu1  ;;  %v1776_v27 = vadd.f32 %v3847_v30, %v3852_v58 }
 0x213   :  { %v1873_v16 = vmax.f32 %v1754_v38, 0.0 }
 0x218   :  { %v1755_v4 = vpop.f32.mrf.mxu2 }
 0x219   :  { %v1777_v51 = vpop.f32.mrf.mxu3 }
 0x21a   :  { %v1821_v57 = vpop.f32.mrf.mxu1  ;;  %v1798_v51 = vadd.f32 %v3837_v43, %v1776_v27 }
 0x220   :  { %v1832_v52 = vpop.f32.mrf.mxu2 }
 0x221   :  { %v1833_v21 = vadd.f32 %v1832_v52, %v1811_v15  ;;  %v1854_v8 = vpop.f32.mrf.mxu3 }
 0x223   :  { %v1855_v6 = vadd.f32 %v1854_v8, %v1833_v21 }
 0x225   :  { %v1868_v13 = vmax.f32 %v1855_v6, 0.0 }
 0x227   :  { %v1875_v20 = vmul.f32 %v1868_v13, %v1867_v53 }
 0x228   :  { %v1834_v40 = vpop.f32.mrf.mxu2 }
 0x229   :  { %v1879_v47 = vadd.f32 %v1875_v20, %v3734_v12  ;;  %v1835_v14 = vadd.f32 %v1834_v40, %v1813_v19  ;;  %v1856_v25 = vpop.f32.mrf.mxu3  ;;  %v1773_v12 = vadd.f32 %v3841_v23, %v3852_v58 }
 0x22b   :  { %1883 = vst [vmem:[#allocation2 + $0x8] sm:$0xff] %v1879_v47  ;;  %v1857_v29 = vadd.f32 %v1856_v25, %v1835_v14  ;;  %v1907_v41 = vpack.c.bf16 %v1879_v47, %v1879_v47  ;;  %v1795_v37 = vadd.f32 %v3835_v0, %v1773_v12  ;;  %v3308_v25 = vld [vmem:[#allocation3 + $0x2c] sm:$0xf] }
 0x22d   :  { %v1870_v33 = vmax.f32 %v1857_v29, 0.0  ;;  %1912 = vst [vmem:[#allocation3 + $0x4] sm:$0xf] %v1907_v41  ;;  %v1817_v23 = vadd.f32 %v3843_v1, %v1795_v37 }
 0x22f   :  { %v1876_v46 = vmul.f32 %v1870_v33, %v1869_v34 }
 0x230   :  { %v1837_v59 = vpop.f32.mrf.mxu2 }
 0x231   :  { %v1880_v35 = vadd.f32 %v1876_v46, %v3745_v24  ;;  %v1859_v9 = vpop.f32.mrf.mxu3  ;;  %v1751_v24 = vadd.f32 %v3839_v42, %v3827_v5  ;;  %v1820_v5 = vadd.f32 %v3849_v60, %v1798_v51 }
 0x232   :  { %v1887_v26 = vld [vmem:[#allocation2 + $0x7] sm:$0xff] }
 0x233   :  { %1884 = vst [vmem:[#allocation2 + $0x10] sm:$0xff] %v1880_v35  ;;  %v1892_v44 = vpack.c.bf16 %v1887_v26, %v1887_v26  ;;  %v1908_v45 = vpack.c.bf16 %v1880_v35, %v1880_v35  ;;  %v1871_v55 = vmax.f32 %v1751_v24, 0.0 }
 0x234   :  { %v3305_v30 = vld [vmem:[#allocation3 + $0x4] sm:$0xf] }
 0x235   :  { %1897 = vst [vmem:[#allocation3] sm:$0xf] %v1892_v44 }
 0x236   :  { %1913 = vst [vmem:[#allocation3 + $0x18] sm:$0xf] %v1908_v45 }
 0x238   :  { %v1838_v49 = vpop.f32.mrf.mxu2 }
 0x239   :  { %v1839_v10 = vadd.f32 %v1838_v49, %v1817_v23  ;;  %v1860_v4 = vpop.f32.mrf.mxu3 }
 0x23a   :  { %v1888_v54 = vld [vmem:[#allocation2 + $0xf] sm:$0xff]  ;;  %v1889_v52 = vld [vmem:[#allocation2 + $0x17] sm:$0xff] }
 0x23b   :  { %v1917_v0 = vld [vmem:[#allocation2 + $0x9] sm:$0xff]  ;;  %v1918_v28 = vld [vmem:[#allocation2 + $0x11] sm:$0xff]  ;;  %v1861_v57 = vadd.f32 %v1860_v4, %v1839_v10  ;;  %v1893_v11 = vpack.c.bf16 %v1888_v54, %v1888_v54  ;;  %v1894_v58 = vpack.c.bf16 %v1889_v52, %v1889_v52  ;;  %v3354_v54 = vld [vmem:[%s3891_s6] ss:$0 sm:$0xff]  ;;  %s3519_s6 = smov [#allocation13]  }
 0x23c   :  { %v1922_v15 = vpack.c.bf16 %v1917_v0, %v1917_v0  ;;  %v1923_v18 = vpack.c.bf16 %v1918_v28, %v1918_v28  ;;  %v3007_v13 = vld [vmem:[#allocation3] sm:$0xf]  ;;  %s2268_s28 = sshll.u32 %s3519_s6, 4  ;;  %s2269_s28 = int_to_ptr.vmem [resolvable:$true] %s2268_s28 }
 0x23d   :  { %v1872_v1 = vmax.f32 %v1861_v57, 0.0  ;;  %1898 = vst [vmem:[#allocation3 + $0x14] sm:$0xf] %v1893_v11  ;;  %v3009_v21 = vld [vmem:[#allocation3 + $0x14] sm:$0xf0] }
 0x23e   :  { %v3012_v8 = vor.u32 %v3305_v30, %v3009_v21  ;;  %1927 = vst [vmem:[#allocation3 + $0x8] sm:$0xf] %v1922_v15 }
 0x23f   :  { %v1877_v42 = vmul.f32 %v1872_v1, %v1871_v55  ;;  %1928 = vst [vmem:[#allocation3 + $0x1c] sm:$0xf] %v1923_v18  ;;  %v2247_v18 = vld [vmem:[#allocation4] sm:$0xff] }
 0x240   :  { %v1841_v43 = vpop.f32.mrf.mxu2  ;;  %2211 = vmatmul.bf16.vlgmr.msrb.gmra.mxu1 %v3012_v8  ;;  %1899 = vst [vmem:[#allocation3 + $0x28] sm:$0xf] %v1894_v58 }
 0x241   :  { %v1881_v6 = vadd.f32 %v1877_v42, %v3764_v22  ;;  %v1842_v7 = vadd.f32 %v1841_v43, %v1820_v5  ;;  %v1863_v56 = vpop.f32.mrf.mxu3  ;;  %v2248_v42 = vld [vmem:[#allocation4 + $0x8] sm:$0xff] }
 0x243   :  { %1885 = vst [vmem:[#allocation2 + $0x20] sm:$0xff] %v1881_v6  ;;  %v1864_v3 = vadd.f32 %v1863_v56, %v1842_v7  ;;  %v1910_v53 = vpack.c.bf16 %v1881_v6, %v1881_v6 }
 0x244   :  { %v3306_v2 = vld [vmem:[#allocation3 + $0x10] sm:$0xf0] }
 0x245   :  { %v1874_v19 = vmax.f32 %v1864_v3, 0.0  ;;  %v3008_v60 = vor.u32 %v3306_v2, %v3007_v13  ;;  %v3015_v20 = vld [vmem:[#allocation3 + $0x8] sm:$0xf]  ;;  %1915 = vst [vmem:[#allocation3 + $0x40] sm:$0xf] %v1910_v53 }
 0x246   :  { %v3307_v40 = vld [vmem:[#allocation3 + $0x18] sm:$0xf0] }
 0x247   :  { %v1878_v48 = vmul.f32 %v1874_v19, %v1873_v16  ;;  %2189 = vmatmul.bf16.vlgmr.msrb.gmra.mxu0 %v3008_v60  ;;  %v3016_v47 = vor.u32 %v3307_v40, %v3015_v20  ;;  %v3019_v46 = vld [vmem:[#allocation3 + $0x28] sm:$0xf]  ;;  %v2255_v40 = vld [vmem:[#allocation4 + $0x10] sm:$0xff] }
 0x248   :  { %v1843_v14 = vpop.f32.mrf.mxu2 }
 0x249   :  { %v1882_v62 = vadd.f32 %v1878_v48, %v3780_v61  ;;  %2233 = vmatmul.bf16.vlgmr.msrb.gmra.mxu2 %v3016_v47  ;;  %v1865_v22 = vpop.f32.mrf.mxu3 }
 0x24a   :  { %v1890_v36 = vld [vmem:[#allocation2 + $0x1f] sm:$0xff] }
 0x24b   :  { %v1919_v29 = vld [vmem:[#allocation2 + $0x19] sm:$0xff]  ;;  %1886 = vst [vmem:[#allocation2 + $0x28] sm:$0xff] %v1882_v62  ;;  %v1895_v63 = vpack.c.bf16 %v1890_v36, %v1890_v36  ;;  %v1911_v39 = vpack.c.bf16 %v1882_v62, %v1882_v62 }
 0x24c   :  { %v1924_v32 = vpack.c.bf16 %v1919_v29, %v1919_v29  ;;  %v3021_v41 = vld [vmem:[#allocation3 + $0x3c] sm:$0xf0] }
 0x24d   :  { %1900 = vst [vmem:[#allocation3 + $0x3c] sm:$0xf] %v1895_v63  ;;  %v3024_v34 = vor.u32 %v3308_v25, %v3021_v41  ;;  %v2256_v29 = vld [vmem:[#allocation4 + $0x18] sm:$0xff] }
 0x24e   :  { %1929 = vst [vmem:[#allocation3 + $0x30] sm:$0xf] %v1924_v32 }
 0x24f   :  { %1916 = vst [vmem:[#allocation3 + $0x54] sm:$0xf] %v1911_v39 }
 0x250   :  { %2216 = vmatmul.bf16.gmra.mxu1 %v3024_v34 }
 0x252   :  { %v1920_v33 = vld [vmem:[#allocation2 + $0x21] sm:$0xff]  ;;  %v1921_v17 = vld [vmem:[#allocation2 + $0x29] sm:$0xff] }
 0x253   :  { %v1891_v31 = vld [vmem:[#allocation2 + $0x27] sm:$0xff]  ;;  %v1925_v50 = vpack.c.bf16 %v1920_v33, %v1920_v33  ;;  %v1926_v12 = vpack.c.bf16 %v1921_v17, %v1921_v17 }
 0x254   :  { %v1896_v61 = vpack.c.bf16 %v1891_v31, %v1891_v31  ;;  %v3309_v59 = vld [vmem:[#allocation3 + $0x38] sm:$0xf0] }
 0x255   :  { %v3020_v35 = vor.u32 %v3309_v59, %v3019_v46  ;;  %1930 = vst [vmem:[#allocation3 + $0x44] sm:$0xf] %v1925_v50  ;;  %v3027_v9 = vld [vmem:[#allocation3 + $0x30] sm:$0xf] }
 0x256   :  { %1901 = vst [vmem:[#allocation3 + $0x50] sm:$0xf] %v1896_v61 }
 0x257   :  { %2194 = vmatmul.bf16.gmra.mxu0 %v3020_v35  ;;  %1931 = vst [vmem:[#allocation3 + $0x58] sm:$0xf] %v1926_v12 }
 0x25c   :  { %v3310_v26 = vld [vmem:[#allocation3 + $0x40] sm:$0xf0] }
 0x25d   :  { %v3028_v37 = vor.u32 %v3310_v26, %v3027_v9  ;;  %v1940_v44 = vld [vmem:[#allocation3 + $0x50] sm:$0xff] }
 0x25e   :  { %v2017_v45 = vunpack.c.h.b16 %v1940_v44  ;;  %v2016_v23 = vunpack.c.l.b16 %v1940_v44  ;;  %v1941_v24 = vld [vmem:[#allocation3 + $0x58] sm:$0xf] }
 0x25f   :  { %2238 = vmatmul.bf16.gmra.mxu2 %v3028_v37  ;;  %v2018_v10 = vunpack.c.l.b16 %v1941_v24 }
 0x260   :  { %v2026_v27 = vpack.c.b16 %v2017_v45, %v2017_v45  ;;  %v2025_v49 = vpack.c.b16 %v2016_v23, %v2016_v23 }
 0x261   :  { %v2027_v4 = vpack.c.b16 %v2018_v10, %v2018_v10 }
 0x262   :  { %2220 = vmatmul.bf16.gmra.mxu1 %v2026_v27 }
 0x267   :  { %2198 = vmatmul.bf16.gmra.mxu0 %v2025_v49 }
 0x26f   :  { %2242 = vmatmul.bf16.gmra.mxu2 %v2027_v4 }
 0x2bd   :  { %v2212_v51 = vpop.f32.mrf.mxu1 }
 0x2c4   :  { %v2190_v0 = vpop.f32.mrf.mxu0 }
 0x2c5   :  { %v2214_v28 = vpop.f32.mrf.mxu1  ;;  %v2191_v57 = vadd.f32 %v3354_v54, %v2190_v0 }
 0x2c7   :  { %v2213_v11 = vadd.f32 %v2212_v51, %v2191_v57 }
 0x2cc   :  { %v2234_v15 = vpop.f32.mrf.mxu2  ;;  %v2192_v52 = vpop.f32.mrf.mxu0 }
 0x2cd   :  { %v2235_v30 = vadd.f32 %v2234_v15, %v2213_v11  ;;  %v2217_v58 = vpop.f32.mrf.mxu1  ;;  %v2193_v1 = vadd.f32 %v3354_v54, %v2192_v52 }
 0x2cf   :  { %v2249_v55 = vadd.f32 %v2247_v18, %v2235_v30  ;;  %v2215_v8 = vadd.f32 %v2214_v28, %v2193_v1 }
 0x2d1   :  { %v2251_v21 = vmax.f32 %v2249_v55, 0.0 }
 0x2d3   :  { %2253 = vst [vmem:[#allocation13] sm:$0xff] %v2251_v21 }
 0x2d4   :  { %v2236_v5 = vpop.f32.mrf.mxu2  ;;  %v2195_v43 = vpop.f32.mrf.mxu0 }
 0x2d5   :  { %v2237_v38 = vadd.f32 %v2236_v5, %v2215_v8  ;;  %v2218_v7 = vpop.f32.mrf.mxu1 }
 0x2d7   :  { %v2250_v6 = vadd.f32 %v2248_v42, %v2237_v38 }
 0x2d9   :  { %v2252_v56 = vmax.f32 %v2250_v6, 0.0 }
 0x2db   :  { %2254 = vst [vmem:[#allocation13 + $0x8] sm:$0xff] %v2252_v56 }
 0x2dc   :  { %v2196_v3 = vpop.f32.mrf.mxu0 }
 0x2dd   :  { %v2197_v16 = vadd.f32 %v3354_v54, %v2196_v3 }
 0x2df   :  { %v2221_v53 = vpop.f32.mrf.mxu1  ;;  %v2219_v60 = vadd.f32 %v2218_v7, %v2197_v16 }
 0x2e2   :  { %v2239_v13 = vpop.f32.mrf.mxu2 }
 0x2e4   :  { %v2199_v2 = vpop.f32.mrf.mxu0 }
 0x2e5   :  { %v2200_v14 = vadd.f32 %v3354_v54, %v2199_v2 }
 0x2e7   :  { %v2223_v19 = vpop.f32.mrf.mxu1  ;;  %v2222_v36 = vadd.f32 %v2221_v53, %v2200_v14 }
 0x2ea   :  { %v2240_v20 = vpop.f32.mrf.mxu2 }
 0x2eb   :  { %v2241_v48 = vadd.f32 %v2240_v20, %v2219_v60 }
 0x2ec   :  { %v2201_v47 = vpop.f32.mrf.mxu0 }
 0x2ed   :  { %v2257_v62 = vadd.f32 %v2255_v40, %v2241_v48 }
 0x2ef   :  { %v2259_v22 = vmax.f32 %v2257_v62, 0.0 }
 0x2f1   :  { %2262 = vst [vmem:[#allocation13 + $0x10] sm:$0xff] %v2259_v22 }
 0x2f2   :  { %v2243_v25 = vpop.f32.mrf.mxu2 }
 0x2f3   :  { %v2244_v63 = vadd.f32 %v2243_v25, %v2222_v36 }
 0x2f5   :  { %v2258_v32 = vadd.f32 %v2256_v29, %v2244_v63 }
 0x2f7   :  { %v2260_v39 = vmax.f32 %v2258_v32, 0.0 }
 0x2f9   :  { %2263 = vst [vmem:[#allocation13 + $0x18] sm:$0xff] %v2260_v39 }
 0x2fa   :  { %v2245_v41 = vpop.f32.mrf.mxu2  ;;  %2276 = dma.vmem_to_hbm [thread:$0]  %s2269_s28, 512, %s2271_s8, [#allocation6], %s3509_s9, %s3509_s9, %s3510_s10  }
 0x2fb   :  { %3506 = dma.done.wait [#allocation6], 512  }
 0x2fc   :  { %3507 = vsyncadd [#allocation6], 4294966784 }
 0x2fd   :  { %2281 = vsyncpa [#allocation5], 1 }
 0x2fe   :  { %2282 = vsyncpa [#allocation8], 1 }
 0x2ff   :  { %2283 = vsyncpa [#allocation11], 1 }
 0x300   :  { %2284 = vsyncpa [#allocation6], 1 }

</bundles_post_ra>
